<compile_context>
chip_gen: v7x
topology: tpu7x:2x2x1
jax: 0.10.0
libtpu: 0.0.40
codegen_flags: <defaults>
</compile_context>

<pallas_src>
import functools

import jax
import jax.numpy as jnp
from jax.experimental import pallas as pl
from jax.experimental.pallas import tpu as pltpu

FEATURES = 25   # x_dim = data_dim = features = 25
HIDDEN = 50     # units = cells = 50
GP = 128        # per-gate lane-padded width (one full vreg lane block)
SUBLANES = 8    # fp32 sublane count -- batch padded to a multiple of this


def _lstm_block_kernel(gx_ref, whh_ref, out_ref, h_scr, c_scr, *, tb, unroll):
    """Runs `tb` timesteps of the LSTM recurrence per grid step.

    gx_ref : (tb, bb, 4*GP) bf16  precomputed x_t @ W_ih^T + bias (order i,f,o,g)
    whh_ref: (GP, 4*GP)     bf16  lane-padded recurrent weights (h -> gates)
    out_ref: (tb, bb, GP)   f32   hidden states for this time block (lane-dense)
    h_scr / c_scr: (bb, GP) f32   recurrent state carried across time blocks
    """

    # Grid is (batch_block, time_block); re-init state at the start of each
    # batch block's time sweep.
    @pl.when(pl.program_id(1) == 0)
    def _():
        h_scr[...] = jnp.zeros_like(h_scr)
        c_scr[...] = jnp.zeros_like(c_scr)

    # bf16 weights: 128x512 = 32 vregs, loaded once per block (constant-index
    # BlockSpec -> Pallas does not re-DMA it across grid steps either).
    whh = whh_ref[...]

    def step(t, carry):
        h, c = carry                                   # f32 state
        # Single MXU matmul per step (bf16 x bf16 -> f32 accumulate); the
        # x-projection + bias are already folded into gx.
        gates = gx_ref[t].astype(jnp.float32) + jnp.dot(
            h.astype(jnp.bfloat16), whh, preferred_element_type=jnp.float32)
        # sigmoid(x) = 0.5*tanh(0.5*x) + 0.5  (exact; 1 EUP op per vreg).
        sig = 0.5 * jnp.tanh(0.5 * gates[:, : 3 * GP])  # contiguous i | f | o
        i_g = sig[:, 0 * GP:1 * GP] + 0.5
        f_g = sig[:, 1 * GP:2 * GP] + 0.5
        o_g = sig[:, 2 * GP:3 * GP] + 0.5
        g_g = jnp.tanh(gates[:, 3 * GP:4 * GP])
        c_new = f_g * c + i_g * g_g
        h_new = o_g * jnp.tanh(c_new)
        out_ref[t] = h_new.astype(out_ref.dtype)        # full-lane (bb,128) store
        return h_new, c_new

    h_fin, c_fin = jax.lax.fori_loop(
        0, tb, step, (h_scr[...], c_scr[...]), unroll=unroll)
    h_scr[...] = h_fin
    c_scr[...] = c_fin


def _pad_reorder_gates(w, H):
    """(4H, ...) in PyTorch gate order (i,f,g,o) -> (4*GP, ...) in order
    (i,f,o,g), each gate zero-padded from H to GP rows."""
    i, f, g, o = jnp.split(w, 4, axis=0)
    pad = [(0, GP - H)] + [(0, 0)] * (w.ndim - 1)
    return jnp.concatenate([jnp.pad(b, pad) for b in (i, f, o, g)], axis=0)


def _round_up(n, m):
    return ((n + m - 1) // m) * m


def _num_tensorcores():
    try:
        return max(1, int(getattr(jax.devices()[0], "num_cores", 1)))
    except Exception:  # pragma: no cover
        return 1


def one_to_one_lstm(x, w_ih, w_hh, b_ih, b_hh):
    """x: (T, B, F) float32 (batch_first=False, PyTorch layout).
    Weights in PyTorch nn.LSTM layout: w_ih (4H, F), w_hh (4H, H),
    b_ih (4H,), b_hh (4H,).  Returns the full hidden sequence (T, B, H)."""
    T, B, F = x.shape
    H = w_hh.shape[1]
    x = x.astype(jnp.float32)

    # ---- batch padding / blocking ------------------------------------------
    Bp = _round_up(B, SUBLANES)
    # Only split batch across a "parallel" grid axis when there is a second
    # TensorCore (v7x) and enough rows; on 1-TC chips the axis would serialize.
    if Bp >= 2 * SUBLANES and _num_tensorcores() >= 2:
        nb = 2
        Bp = _round_up(Bp, 2 * SUBLANES)
        bb = Bp // 2
    else:
        nb = 1
        bb = Bp

    # ---- time padding / blocking (never degenerate to tb=1) ----------------
    tb = min(T, 128)
    Tp = _round_up(T, tb)
    nt = Tp // tb

    # ---- parameter massaging (once, outside the recurrence) ----------------
    w_ih_p = _pad_reorder_gates(jnp.asarray(w_ih, jnp.float32), H)    # (4GP, F)
    w_hh_p = _pad_reorder_gates(jnp.asarray(w_hh, jnp.float32), H)    # (4GP, H)
    whh_t = jnp.pad(w_hh_p, ((0, 0), (0, GP - H))).T                  # (GP, 4GP)
    whh_t = whh_t.astype(jnp.bfloat16)
    bias = _pad_reorder_gates(
        (jnp.asarray(b_ih, jnp.float32)
         + jnp.asarray(b_hh, jnp.float32))[:, None], H)[:, 0]         # (4GP,)

    # ---- hoisted input projection: one big matmul under XLA (f32) ----------
    x_p = jnp.pad(x, ((0, 0), (0, Bp - B), (0, 0)))                   # (T, Bp, F)
    gx = (x_p.reshape(T * Bp, F) @ w_ih_p.T + bias).reshape(T, Bp, 4 * GP)
    gx = jnp.pad(gx, ((0, Tp - T), (0, 0), (0, 0))).astype(jnp.bfloat16)

    unroll = True if tb <= 32 else 16
    kernel = functools.partial(_lstm_block_kernel, tb=tb, unroll=unroll)

    out_p = pl.pallas_call(
        kernel,
        out_shape=jax.ShapeDtypeStruct((Tp, Bp, GP), jnp.float32),
        grid_spec=pltpu.PrefetchScalarGridSpec(
            num_scalar_prefetch=0,
            grid=(nb, nt),
            in_specs=[
                pl.BlockSpec((tb, bb, 4 * GP), lambda b, t: (t, b, 0)),
                pl.BlockSpec((GP, 4 * GP), lambda b, t: (0, 0)),
            ],
            out_specs=pl.BlockSpec((tb, bb, GP), lambda b, t: (t, b, 0)),
            scratch_shapes=[
                pltpu.VMEM((bb, GP), jnp.float32),   # h state (persists over time)
                pltpu.VMEM((bb, GP), jnp.float32),   # c state
            ],
        ),
        compiler_params=pltpu.CompilerParams(
            # batch blocks independent; time axis is the serial recurrence
            dimension_semantics=("parallel", "arbitrary"),
        ),
    )(gx, whh_t)

    return out_p[:T, :B, :H]


def _lstm_reference(x, w_ih, w_hh, b_ih, b_hh):
    """Pure-JAX f32 reference matching torch.nn.LSTM forward (h0=c0=0)."""
    b = b_ih + b_hh
    H = w_hh.shape[1]

    def step(carry, x_t):
        h, c = carry
        gates = x_t @ w_ih.T + h @ w_hh.T + b
        i_g = jax.nn.sigmoid(gates[:, 0 * H:1 * H])
        f_g = jax.nn.sigmoid(gates[:, 1 * H:2 * H])
        g_g = jnp.tanh(gates[:, 2 * H:3 * H])
        o_g = jax.nn.sigmoid(gates[:, 3 * H:4 * H])
        c_new = f_g * c + i_g * g_g
        h_new = o_g * jnp.tanh(c_new)
        return (h_new, c_new), h_new

    B = x.shape[1]
    h0 = jnp.zeros((B, H), jnp.float32)
    c0 = jnp.zeros((B, H), jnp.float32)
    _, out = jax.lax.scan(step, (h0, c0), x)
    return out


if __name__ == "__main__":
    key = jax.random.PRNGKey(0)
    T, B, F, H = 8, 2, FEATURES, HIDDEN

    k_x, k_wih, k_whh, k_bih, k_bhh = jax.random.split(key, 5)
    # Deterministic param init (uniform(-1/sqrt(H), 1/sqrt(H)) like PyTorch).
    bound = 1.0 / jnp.sqrt(jnp.float32(H))
    w_ih = jax.random.uniform(k_wih, (4 * H, F), jnp.float32, -bound, bound)
    w_hh = jax.random.uniform(k_whh, (4 * H, H), jnp.float32, -bound, bound)
    b_ih = jax.random.uniform(k_bih, (4 * H,), jnp.float32, -bound, bound)
    b_hh = jax.random.uniform(k_bhh, (4 * H,), jnp.float32, -bound, bound)

    x = jax.random.normal(k_x, (T, B, F), jnp.float32)

    out = one_to_one_lstm(x, w_ih, w_hh, b_ih, b_hh)
    out = jax.block_until_ready(out)

    ref = _lstm_reference(x, w_ih, w_hh, b_ih, b_hh)
    assert out.shape == (T, B, H)
    # bf16 recurrent matmul / bf16 gx: tolerance loosened vs the f32 reference
    # (per perf-review correctness note).
    assert jnp.allclose(out, ref, atol=5e-2, rtol=5e-2), "mismatch vs reference"

    print("KERNEL_OK")
</pallas_src>

<mosaic_0001>
module attributes {stable_mosaic.version = 11 : i64} {
  func.func @_lstm_block_kernel(%arg0: i32, %arg1: i32, %arg2: memref<8x8x512xbf16, #tpu.memory_space<vmem>>, %arg3: memref<128x512xbf16, #tpu.memory_space<vmem>>, %arg4: memref<8x8x128xf32, #tpu.memory_space<vmem>>, %arg5: memref<8x128xf32, #tpu.memory_space<vmem>>, %arg6: memref<8x128xf32, #tpu.memory_space<vmem>>) attributes {dimension_semantics = [#tpu.dimension_semantics<parallel>, #tpu.dimension_semantics<arbitrary>], iteration_bounds = array<i64: 1, 1>, scalar_prefetch = 0 : i64, scratch_operands = 2 : i64, tpu.core_type = #tpu.core_type<tc>, window_params = [{transform_indices = @transform_0, window_bounds = array<i64: 8, 8, 512>}, {pipeline_mode = #tpu.pipeline_mode<synchronous>, transform_indices = @transform_1, window_bounds = array<i64: 128, 512>}, {transform_indices = @transform_2, window_bounds = array<i64: 8, 8, 128>}]} {
    %c0_i32 = arith.constant 0 : i32
    %0 = arith.cmpi eq, %arg1, %c0_i32 : i32
    %1 = arith.extui %0 : i1 to i32
    %c0_i32_0 = arith.constant 0 : i32
    %2 = arith.cmpi ne, %1, %c0_i32_0 : i32
    scf.if %2 {
      %cst_90 = arith.constant 0.000000e+00 : f32
      %272 = vector.broadcast %cst_90 : f32 to vector<8x128xf32>
      %c0_91 = arith.constant 0 : index
      %c0_92 = arith.constant 0 : index
      %273 = vector.load %arg5[%c0_91, %c0_92] : memref<8x128xf32, #tpu.memory_space<vmem>>, vector<8x128xf32>
      tpu.vector_store %arg5[%c0_91, %c0_92], %272 {strides = array<i32>} : memref<8x128xf32, #tpu.memory_space<vmem>>, vector<8x128xf32>,
      %cst_93 = arith.constant 0.000000e+00 : f32
      %274 = vector.broadcast %cst_93 : f32 to vector<8x128xf32>
      %c0_94 = arith.constant 0 : index
      %c0_95 = arith.constant 0 : index
      %275 = vector.load %arg6[%c0_94, %c0_95] : memref<8x128xf32, #tpu.memory_space<vmem>>, vector<8x128xf32>
      tpu.vector_store %arg6[%c0_94, %c0_95], %274 {strides = array<i32>} : memref<8x128xf32, #tpu.memory_space<vmem>>, vector<8x128xf32>,
    } else {
    }
    %c0 = arith.constant 0 : index
    %c0_1 = arith.constant 0 : index
    %3 = vector.load %arg3[%c0, %c0_1] : memref<128x512xbf16, #tpu.memory_space<vmem>>, vector<128x512xbf16>
    %c0_2 = arith.constant 0 : index
    %c0_3 = arith.constant 0 : index
    %4 = vector.load %arg5[%c0_2, %c0_3] : memref<8x128xf32, #tpu.memory_space<vmem>>, vector<8x128xf32>
    %c0_4 = arith.constant 0 : index
    %c0_5 = arith.constant 0 : index
    %5 = vector.load %arg6[%c0_4, %c0_5] : memref<8x128xf32, #tpu.memory_space<vmem>>, vector<8x128xf32>
    %c0_i32_6 = arith.constant 0 : i32
    %6 = arith.index_cast %c0_i32_6 : i32 to index
    %c0_7 = arith.constant 0 : index
    %c0_8 = arith.constant 0 : index
    %7 = vector.load %arg2[%6, %c0_7, %c0_8] : memref<8x8x512xbf16, #tpu.memory_space<vmem>>, vector<1x8x512xbf16>
    %8 = vector.shape_cast %7 : vector<1x8x512xbf16> to vector<8x512xbf16>
    %9 = arith.extf %8 : vector<8x512xbf16> to vector<8x512xf32>
    %10 = arith.truncf %4 : vector<8x128xf32> to vector<8x128xbf16>
    %cst = arith.constant dense<0.000000e+00> : vector<8x512xf32>
    %11 = tpu.matmul %10, %3, %cst {dimension_numbers = #tpu.dot_dimension_numbers<[1], [0], [0], [1], [0, 0, 1, 1], [], []>} : vector<8x128xbf16>, vector<128x512xbf16>, vector<8x512xf32> -> vector<8x512xf32>
    %12 = arith.addf %9, %11 : vector<8x512xf32>
    %13 = vector.extract_strided_slice %12 {offsets = [0, 0], sizes = [8, 384], strides = [1, 1]} : vector<8x512xf32> to vector<8x384xf32>
    %cst_9 = arith.constant 5.000000e-01 : f32
    %14 = vector.broadcast %cst_9 : f32 to vector<8x384xf32>
    %15 = arith.mulf %14, %13 : vector<8x384xf32>
    %16 = math.tanh %15 : vector<8x384xf32>
    %cst_10 = arith.constant 5.000000e-01 : f32
    %17 = vector.broadcast %cst_10 : f32 to vector<8x384xf32>
    %18 = arith.mulf %17, %16 : vector<8x384xf32>
    %19 = vector.extract_strided_slice %18 {offsets = [0, 0], sizes = [8, 128], strides = [1, 1]} : vector<8x384xf32> to vector<8x128xf32>
    %cst_11 = arith.constant 5.000000e-01 : f32
    %20 = vector.broadcast %cst_11 : f32 to vector<8x128xf32>
    %21 = arith.addf %19, %20 : vector<8x128xf32>
    %22 = vector.extract_strided_slice %18 {offsets = [0, 128], sizes = [8, 128], strides = [1, 1]} : vector<8x384xf32> to vector<8x128xf32>
    %cst_12 = arith.constant 5.000000e-01 : f32
    %23 = vector.broadcast %cst_12 : f32 to vector<8x128xf32>
    %24 = arith.addf %22, %23 : vector<8x128xf32>
    %25 = vector.extract_strided_slice %18 {offsets = [0, 256], sizes = [8, 128], strides = [1, 1]} : vector<8x384xf32> to vector<8x128xf32>
    %cst_13 = arith.constant 5.000000e-01 : f32
    %26 = vector.broadcast %cst_13 : f32 to vector<8x128xf32>
    %27 = arith.addf %25, %26 : vector<8x128xf32>
    %28 = vector.extract_strided_slice %12 {offsets = [0, 384], sizes = [8, 128], strides = [1, 1]} : vector<8x512xf32> to vector<8x128xf32>
    %29 = math.tanh %28 : vector<8x128xf32>
    %30 = arith.mulf %24, %5 : vector<8x128xf32>
    %31 = arith.mulf %21, %29 : vector<8x128xf32>
    %32 = arith.addf %30, %31 : vector<8x128xf32>
    %33 = math.tanh %32 : vector<8x128xf32>
    %34 = arith.mulf %27, %33 : vector<8x128xf32>
    %35 = arith.index_cast %c0_i32_6 : i32 to index
    %c0_14 = arith.constant 0 : index
    %c0_15 = arith.constant 0 : index
    %36 = vector.load %arg4[%35, %c0_14, %c0_15] : memref<8x8x128xf32, #tpu.memory_space<vmem>>, vector<1x8x128xf32>
    %37 = vector.shape_cast %36 : vector<1x8x128xf32> to vector<8x128xf32>
    %38 = vector.shape_cast %34 : vector<8x128xf32> to vector<1x8x128xf32>
    tpu.vector_store %arg4[%35, %c0_14, %c0_15], %38 {strides = array<i32>} : memref<8x8x128xf32, #tpu.memory_space<vmem>>, vector<1x8x128xf32>,
    %c1_i32 = arith.constant 1 : i32
    %39 = arith.index_cast %c1_i32 : i32 to index
    %c0_16 = arith.constant 0 : index
    %c0_17 = arith.constant 0 : index
    %40 = vector.load %arg2[%39, %c0_16, %c0_17] : memref<8x8x512xbf16, #tpu.memory_space<vmem>>, vector<1x8x512xbf16>
    %41 = vector.shape_cast %40 : vector<1x8x512xbf16> to vector<8x512xbf16>
    %42 = arith.extf %41 : vector<8x512xbf16> to vector<8x512xf32>
    %43 = arith.truncf %34 : vector<8x128xf32> to vector<8x128xbf16>
    %cst_18 = arith.constant dense<0.000000e+00> : vector<8x512xf32>
    %44 = tpu.matmul %43, %3, %cst_18 {dimension_numbers = #tpu.dot_dimension_numbers<[1], [0], [0], [1], [0, 0, 1, 1], [], []>} : vector<8x128xbf16>, vector<128x512xbf16>, vector<8x512xf32> -> vector<8x512xf32>
    %45 = arith.addf %42, %44 : vector<8x512xf32>
    %46 = vector.extract_strided_slice %45 {offsets = [0, 0], sizes = [8, 384], strides = [1, 1]} : vector<8x512xf32> to vector<8x384xf32>
    %cst_19 = arith.constant 5.000000e-01 : f32
    %47 = vector.broadcast %cst_19 : f32 to vector<8x384xf32>
    %48 = arith.mulf %47, %46 : vector<8x384xf32>
    %49 = math.tanh %48 : vector<8x384xf32>
    %cst_20 = arith.constant 5.000000e-01 : f32
    %50 = vector.broadcast %cst_20 : f32 to vector<8x384xf32>
    %51 = arith.mulf %50, %49 : vector<8x384xf32>
    %52 = vector.extract_strided_slice %51 {offsets = [0, 0], sizes = [8, 128], strides = [1, 1]} : vector<8x384xf32> to vector<8x128xf32>
    %cst_21 = arith.constant 5.000000e-01 : f32
    %53 = vector.broadcast %cst_21 : f32 to vector<8x128xf32>
    %54 = arith.addf %52, %53 : vector<8x128xf32>
    %55 = vector.extract_strided_slice %51 {offsets = [0, 128], sizes = [8, 128], strides = [1, 1]} : vector<8x384xf32> to vector<8x128xf32>
    %cst_22 = arith.constant 5.000000e-01 : f32
    %56 = vector.broadcast %cst_22 : f32 to vector<8x128xf32>
    %57 = arith.addf %55, %56 : vector<8x128xf32>
    %58 = vector.extract_strided_slice %51 {offsets = [0, 256], sizes = [8, 128], strides = [1, 1]} : vector<8x384xf32> to vector<8x128xf32>
    %cst_23 = arith.constant 5.000000e-01 : f32
    %59 = vector.broadcast %cst_23 : f32 to vector<8x128xf32>
    %60 = arith.addf %58, %59 : vector<8x128xf32>
    %61 = vector.extract_strided_slice %45 {offsets = [0, 384], sizes = [8, 128], strides = [1, 1]} : vector<8x512xf32> to vector<8x128xf32>
    %62 = math.tanh %61 : vector<8x128xf32>
    %63 = arith.mulf %57, %32 : vector<8x128xf32>
    %64 = arith.mulf %54, %62 : vector<8x128xf32>
    %65 = arith.addf %63, %64 : vector<8x128xf32>
    %66 = math.tanh %65 : vector<8x128xf32>
    %67 = arith.mulf %60, %66 : vector<8x128xf32>
    %68 = arith.index_cast %c1_i32 : i32 to index
    %c0_24 = arith.constant 0 : index
    %c0_25 = arith.constant 0 : index
    %69 = vector.load %arg4[%68, %c0_24, %c0_25] : memref<8x8x128xf32, #tpu.memory_space<vmem>>, vector<1x8x128xf32>
    %70 = vector.shape_cast %69 : vector<1x8x128xf32> to vector<8x128xf32>
    %71 = vector.shape_cast %67 : vector<8x128xf32> to vector<1x8x128xf32>
    tpu.vector_store %arg4[%68, %c0_24, %c0_25], %71 {strides = array<i32>} : memref<8x8x128xf32, #tpu.memory_space<vmem>>, vector<1x8x128xf32>,
    %c2_i32 = arith.constant 2 : i32
    %72 = arith.index_cast %c2_i32 : i32 to index
    %c0_26 = arith.constant 0 : index
    %c0_27 = arith.constant 0 : index
    %73 = vector.load %arg2[%72, %c0_26, %c0_27] : memref<8x8x512xbf16, #tpu.memory_space<vmem>>, vector<1x8x512xbf16>
    %74 = vector.shape_cast %73 : vector<1x8x512xbf16> to vector<8x512xbf16>
    %75 = arith.extf %74 : vector<8x512xbf16> to vector<8x512xf32>
    %76 = arith.truncf %67 : vector<8x128xf32> to vector<8x128xbf16>
    %cst_28 = arith.constant dense<0.000000e+00> : vector<8x512xf32>
    %77 = tpu.matmul %76, %3, %cst_28 {dimension_numbers = #tpu.dot_dimension_numbers<[1], [0], [0], [1], [0, 0, 1, 1], [], []>} : vector<8x128xbf16>, vector<128x512xbf16>, vector<8x512xf32> -> vector<8x512xf32>
    %78 = arith.addf %75, %77 : vector<8x512xf32>
    %79 = vector.extract_strided_slice %78 {offsets = [0, 0], sizes = [8, 384], strides = [1, 1]} : vector<8x512xf32> to vector<8x384xf32>
    %cst_29 = arith.constant 5.000000e-01 : f32
    %80 = vector.broadcast %cst_29 : f32 to vector<8x384xf32>
    %81 = arith.mulf %80, %79 : vector<8x384xf32>
    %82 = math.tanh %81 : vector<8x384xf32>
    %cst_30 = arith.constant 5.000000e-01 : f32
    %83 = vector.broadcast %cst_30 : f32 to vector<8x384xf32>
    %84 = arith.mulf %83, %82 : vector<8x384xf32>
    %85 = vector.extract_strided_slice %84 {offsets = [0, 0], sizes = [8, 128], strides = [1, 1]} : vector<8x384xf32> to vector<8x128xf32>
    %cst_31 = arith.constant 5.000000e-01 : f32
    %86 = vector.broadcast %cst_31 : f32 to vector<8x128xf32>
    %87 = arith.addf %85, %86 : vector<8x128xf32>
    %88 = vector.extract_strided_slice %84 {offsets = [0, 128], sizes = [8, 128], strides = [1, 1]} : vector<8x384xf32> to vector<8x128xf32>
    %cst_32 = arith.constant 5.000000e-01 : f32
    %89 = vector.broadcast %cst_32 : f32 to vector<8x128xf32>
    %90 = arith.addf %88, %89 : vector<8x128xf32>
    %91 = vector.extract_strided_slice %84 {offsets = [0, 256], sizes = [8, 128], strides = [1, 1]} : vector<8x384xf32> to vector<8x128xf32>
    %cst_33 = arith.constant 5.000000e-01 : f32
    %92 = vector.broadcast %cst_33 : f32 to vector<8x128xf32>
    %93 = arith.addf %91, %92 : vector<8x128xf32>
    %94 = vector.extract_strided_slice %78 {offsets = [0, 384], sizes = [8, 128], strides = [1, 1]} : vector<8x512xf32> to vector<8x128xf32>
    %95 = math.tanh %94 : vector<8x128xf32>
    %96 = arith.mulf %90, %65 : vector<8x128xf32>
    %97 = arith.mulf %87, %95 : vector<8x128xf32>
    %98 = arith.addf %96, %97 : vector<8x128xf32>
    %99 = math.tanh %98 : vector<8x128xf32>
    %100 = arith.mulf %93, %99 : vector<8x128xf32>
    %101 = arith.index_cast %c2_i32 : i32 to index
    %c0_34 = arith.constant 0 : index
    %c0_35 = arith.constant 0 : index
    %102 = vector.load %arg4[%101, %c0_34, %c0_35] : memref<8x8x128xf32, #tpu.memory_space<vmem>>, vector<1x8x128xf32>
    %103 = vector.shape_cast %102 : vector<1x8x128xf32> to vector<8x128xf32>
    %104 = vector.shape_cast %100 : vector<8x128xf32> to vector<1x8x128xf32>
    tpu.vector_store %arg4[%101, %c0_34, %c0_35], %104 {strides = array<i32>} : memref<8x8x128xf32, #tpu.memory_space<vmem>>, vector<1x8x128xf32>,
    %c3_i32 = arith.constant 3 : i32
    %105 = arith.index_cast %c3_i32 : i32 to index
    %c0_36 = arith.constant 0 : index
    %c0_37 = arith.constant 0 : index
    %106 = vector.load %arg2[%105, %c0_36, %c0_37] : memref<8x8x512xbf16, #tpu.memory_space<vmem>>, vector<1x8x512xbf16>
    %107 = vector.shape_cast %106 : vector<1x8x512xbf16> to vector<8x512xbf16>
    %108 = arith.extf %107 : vector<8x512xbf16> to vector<8x512xf32>
    %109 = arith.truncf %100 : vector<8x128xf32> to vector<8x128xbf16>
    %cst_38 = arith.constant dense<0.000000e+00> : vector<8x512xf32>
    %110 = tpu.matmul %109, %3, %cst_38 {dimension_numbers = #tpu.dot_dimension_numbers<[1], [0], [0], [1], [0, 0, 1, 1], [], []>} : vector<8x128xbf16>, vector<128x512xbf16>, vector<8x512xf32> -> vector<8x512xf32>
    %111 = arith.addf %108, %110 : vector<8x512xf32>
    %112 = vector.extract_strided_slice %111 {offsets = [0, 0], sizes = [8, 384], strides = [1, 1]} : vector<8x512xf32> to vector<8x384xf32>
    %cst_39 = arith.constant 5.000000e-01 : f32
    %113 = vector.broadcast %cst_39 : f32 to vector<8x384xf32>
    %114 = arith.mulf %113, %112 : vector<8x384xf32>
    %115 = math.tanh %114 : vector<8x384xf32>
    %cst_40 = arith.constant 5.000000e-01 : f32
    %116 = vector.broadcast %cst_40 : f32 to vector<8x384xf32>
    %117 = arith.mulf %116, %115 : vector<8x384xf32>
    %118 = vector.extract_strided_slice %117 {offsets = [0, 0], sizes = [8, 128], strides = [1, 1]} : vector<8x384xf32> to vector<8x128xf32>
    %cst_41 = arith.constant 5.000000e-01 : f32
    %119 = vector.broadcast %cst_41 : f32 to vector<8x128xf32>
    %120 = arith.addf %118, %119 : vector<8x128xf32>
    %121 = vector.extract_strided_slice %117 {offsets = [0, 128], sizes = [8, 128], strides = [1, 1]} : vector<8x384xf32> to vector<8x128xf32>
    %cst_42 = arith.constant 5.000000e-01 : f32
    %122 = vector.broadcast %cst_42 : f32 to vector<8x128xf32>
    %123 = arith.addf %121, %122 : vector<8x128xf32>
    %124 = vector.extract_strided_slice %117 {offsets = [0, 256], sizes = [8, 128], strides = [1, 1]} : vector<8x384xf32> to vector<8x128xf32>
    %cst_43 = arith.constant 5.000000e-01 : f32
    %125 = vector.broadcast %cst_43 : f32 to vector<8x128xf32>
    %126 = arith.addf %124, %125 : vector<8x128xf32>
    %127 = vector.extract_strided_slice %111 {offsets = [0, 384], sizes = [8, 128], strides = [1, 1]} : vector<8x512xf32> to vector<8x128xf32>
    %128 = math.tanh %127 : vector<8x128xf32>
    %129 = arith.mulf %123, %98 : vector<8x128xf32>
    %130 = arith.mulf %120, %128 : vector<8x128xf32>
    %131 = arith.addf %129, %130 : vector<8x128xf32>
    %132 = math.tanh %131 : vector<8x128xf32>
    %133 = arith.mulf %126, %132 : vector<8x128xf32>
    %134 = arith.index_cast %c3_i32 : i32 to index
    %c0_44 = arith.constant 0 : index
    %c0_45 = arith.constant 0 : index
    %135 = vector.load %arg4[%134, %c0_44, %c0_45] : memref<8x8x128xf32, #tpu.memory_space<vmem>>, vector<1x8x128xf32>
    %136 = vector.shape_cast %135 : vector<1x8x128xf32> to vector<8x128xf32>
    %137 = vector.shape_cast %133 : vector<8x128xf32> to vector<1x8x128xf32>
    tpu.vector_store %arg4[%134, %c0_44, %c0_45], %137 {strides = array<i32>} : memref<8x8x128xf32, #tpu.memory_space<vmem>>, vector<1x8x128xf32>,
    %c4_i32 = arith.constant 4 : i32
    %138 = arith.index_cast %c4_i32 : i32 to index
    %c0_46 = arith.constant 0 : index
    %c0_47 = arith.constant 0 : index
    %139 = vector.load %arg2[%138, %c0_46, %c0_47] : memref<8x8x512xbf16, #tpu.memory_space<vmem>>, vector<1x8x512xbf16>
    %140 = vector.shape_cast %139 : vector<1x8x512xbf16> to vector<8x512xbf16>
    %141 = arith.extf %140 : vector<8x512xbf16> to vector<8x512xf32>
    %142 = arith.truncf %133 : vector<8x128xf32> to vector<8x128xbf16>
    %cst_48 = arith.constant dense<0.000000e+00> : vector<8x512xf32>
    %143 = tpu.matmul %142, %3, %cst_48 {dimension_numbers = #tpu.dot_dimension_numbers<[1], [0], [0], [1], [0, 0, 1, 1], [], []>} : vector<8x128xbf16>, vector<128x512xbf16>, vector<8x512xf32> -> vector<8x512xf32>
    %144 = arith.addf %141, %143 : vector<8x512xf32>
    %145 = vector.extract_strided_slice %144 {offsets = [0, 0], sizes = [8, 384], strides = [1, 1]} : vector<8x512xf32> to vector<8x384xf32>
    %cst_49 = arith.constant 5.000000e-01 : f32
    %146 = vector.broadcast %cst_49 : f32 to vector<8x384xf32>
    %147 = arith.mulf %146, %145 : vector<8x384xf32>
    %148 = math.tanh %147 : vector<8x384xf32>
    %cst_50 = arith.constant 5.000000e-01 : f32
    %149 = vector.broadcast %cst_50 : f32 to vector<8x384xf32>
    %150 = arith.mulf %149, %148 : vector<8x384xf32>
    %151 = vector.extract_strided_slice %150 {offsets = [0, 0], sizes = [8, 128], strides = [1, 1]} : vector<8x384xf32> to vector<8x128xf32>
    %cst_51 = arith.constant 5.000000e-01 : f32
    %152 = vector.broadcast %cst_51 : f32 to vector<8x128xf32>
    %153 = arith.addf %151, %152 : vector<8x128xf32>
    %154 = vector.extract_strided_slice %150 {offsets = [0, 128], sizes = [8, 128], strides = [1, 1]} : vector<8x384xf32> to vector<8x128xf32>
    %cst_52 = arith.constant 5.000000e-01 : f32
    %155 = vector.broadcast %cst_52 : f32 to vector<8x128xf32>
    %156 = arith.addf %154, %155 : vector<8x128xf32>
    %157 = vector.extract_strided_slice %150 {offsets = [0, 256], sizes = [8, 128], strides = [1, 1]} : vector<8x384xf32> to vector<8x128xf32>
    %cst_53 = arith.constant 5.000000e-01 : f32
    %158 = vector.broadcast %cst_53 : f32 to vector<8x128xf32>
    %159 = arith.addf %157, %158 : vector<8x128xf32>
    %160 = vector.extract_strided_slice %144 {offsets = [0, 384], sizes = [8, 128], strides = [1, 1]} : vector<8x512xf32> to vector<8x128xf32>
    %161 = math.tanh %160 : vector<8x128xf32>
    %162 = arith.mulf %156, %131 : vector<8x128xf32>
    %163 = arith.mulf %153, %161 : vector<8x128xf32>
    %164 = arith.addf %162, %163 : vector<8x128xf32>
    %165 = math.tanh %164 : vector<8x128xf32>
    %166 = arith.mulf %159, %165 : vector<8x128xf32>
    %167 = arith.index_cast %c4_i32 : i32 to index
    %c0_54 = arith.constant 0 : index
    %c0_55 = arith.constant 0 : index
    %168 = vector.load %arg4[%167, %c0_54, %c0_55] : memref<8x8x128xf32, #tpu.memory_space<vmem>>, vector<1x8x128xf32>
    %169 = vector.shape_cast %168 : vector<1x8x128xf32> to vector<8x128xf32>
    %170 = vector.shape_cast %166 : vector<8x128xf32> to vector<1x8x128xf32>
    tpu.vector_store %arg4[%167, %c0_54, %c0_55], %170 {strides = array<i32>} : memref<8x8x128xf32, #tpu.memory_space<vmem>>, vector<1x8x128xf32>,
    %c5_i32 = arith.constant 5 : i32
    %171 = arith.index_cast %c5_i32 : i32 to index
    %c0_56 = arith.constant 0 : index
    %c0_57 = arith.constant 0 : index
    %172 = vector.load %arg2[%171, %c0_56, %c0_57] : memref<8x8x512xbf16, #tpu.memory_space<vmem>>, vector<1x8x512xbf16>
    %173 = vector.shape_cast %172 : vector<1x8x512xbf16> to vector<8x512xbf16>
    %174 = arith.extf %173 : vector<8x512xbf16> to vector<8x512xf32>
    %175 = arith.truncf %166 : vector<8x128xf32> to vector<8x128xbf16>
    %cst_58 = arith.constant dense<0.000000e+00> : vector<8x512xf32>
    %176 = tpu.matmul %175, %3, %cst_58 {dimension_numbers = #tpu.dot_dimension_numbers<[1], [0], [0], [1], [0, 0, 1, 1], [], []>} : vector<8x128xbf16>, vector<128x512xbf16>, vector<8x512xf32> -> vector<8x512xf32>
    %177 = arith.addf %174, %176 : vector<8x512xf32>
    %178 = vector.extract_strided_slice %177 {offsets = [0, 0], sizes = [8, 384], strides = [1, 1]} : vector<8x512xf32> to vector<8x384xf32>
    %cst_59 = arith.constant 5.000000e-01 : f32
    %179 = vector.broadcast %cst_59 : f32 to vector<8x384xf32>
    %180 = arith.mulf %179, %178 : vector<8x384xf32>
    %181 = math.tanh %180 : vector<8x384xf32>
    %cst_60 = arith.constant 5.000000e-01 : f32
    %182 = vector.broadcast %cst_60 : f32 to vector<8x384xf32>
    %183 = arith.mulf %182, %181 : vector<8x384xf32>
    %184 = vector.extract_strided_slice %183 {offsets = [0, 0], sizes = [8, 128], strides = [1, 1]} : vector<8x384xf32> to vector<8x128xf32>
    %cst_61 = arith.constant 5.000000e-01 : f32
    %185 = vector.broadcast %cst_61 : f32 to vector<8x128xf32>
    %186 = arith.addf %184, %185 : vector<8x128xf32>
    %187 = vector.extract_strided_slice %183 {offsets = [0, 128], sizes = [8, 128], strides = [1, 1]} : vector<8x384xf32> to vector<8x128xf32>
    %cst_62 = arith.constant 5.000000e-01 : f32
    %188 = vector.broadcast %cst_62 : f32 to vector<8x128xf32>
    %189 = arith.addf %187, %188 : vector<8x128xf32>
    %190 = vector.extract_strided_slice %183 {offsets = [0, 256], sizes = [8, 128], strides = [1, 1]} : vector<8x384xf32> to vector<8x128xf32>
    %cst_63 = arith.constant 5.000000e-01 : f32
    %191 = vector.broadcast %cst_63 : f32 to vector<8x128xf32>
    %192 = arith.addf %190, %191 : vector<8x128xf32>
    %193 = vector.extract_strided_slice %177 {offsets = [0, 384], sizes = [8, 128], strides = [1, 1]} : vector<8x512xf32> to vector<8x128xf32>
    %194 = math.tanh %193 : vector<8x128xf32>
    %195 = arith.mulf %189, %164 : vector<8x128xf32>
    %196 = arith.mulf %186, %194 : vector<8x128xf32>
    %197 = arith.addf %195, %196 : vector<8x128xf32>
    %198 = math.tanh %197 : vector<8x128xf32>
    %199 = arith.mulf %192, %198 : vector<8x128xf32>
    %200 = arith.index_cast %c5_i32 : i32 to index
    %c0_64 = arith.constant 0 : index
    %c0_65 = arith.constant 0 : index
    %201 = vector.load %arg4[%200, %c0_64, %c0_65] : memref<8x8x128xf32, #tpu.memory_space<vmem>>, vector<1x8x128xf32>
    %202 = vector.shape_cast %201 : vector<1x8x128xf32> to vector<8x128xf32>
    %203 = vector.shape_cast %199 : vector<8x128xf32> to vector<1x8x128xf32>
    tpu.vector_store %arg4[%200, %c0_64, %c0_65], %203 {strides = array<i32>} : memref<8x8x128xf32, #tpu.memory_space<vmem>>, vector<1x8x128xf32>,
    %c6_i32 = arith.constant 6 : i32
    %204 = arith.index_cast %c6_i32 : i32 to index
    %c0_66 = arith.constant 0 : index
    %c0_67 = arith.constant 0 : index
    %205 = vector.load %arg2[%204, %c0_66, %c0_67] : memref<8x8x512xbf16, #tpu.memory_space<vmem>>, vector<1x8x512xbf16>
    %206 = vector.shape_cast %205 : vector<1x8x512xbf16> to vector<8x512xbf16>
    %207 = arith.extf %206 : vector<8x512xbf16> to vector<8x512xf32>
    %208 = arith.truncf %199 : vector<8x128xf32> to vector<8x128xbf16>
    %cst_68 = arith.constant dense<0.000000e+00> : vector<8x512xf32>
    %209 = tpu.matmul %208, %3, %cst_68 {dimension_numbers = #tpu.dot_dimension_numbers<[1], [0], [0], [1], [0, 0, 1, 1], [], []>} : vector<8x128xbf16>, vector<128x512xbf16>, vector<8x512xf32> -> vector<8x512xf32>
    %210 = arith.addf %207, %209 : vector<8x512xf32>
    %211 = vector.extract_strided_slice %210 {offsets = [0, 0], sizes = [8, 384], strides = [1, 1]} : vector<8x512xf32> to vector<8x384xf32>
    %cst_69 = arith.constant 5.000000e-01 : f32
    %212 = vector.broadcast %cst_69 : f32 to vector<8x384xf32>
    %213 = arith.mulf %212, %211 : vector<8x384xf32>
    %214 = math.tanh %213 : vector<8x384xf32>
    %cst_70 = arith.constant 5.000000e-01 : f32
    %215 = vector.broadcast %cst_70 : f32 to vector<8x384xf32>
    %216 = arith.mulf %215, %214 : vector<8x384xf32>
    %217 = vector.extract_strided_slice %216 {offsets = [0, 0], sizes = [8, 128], strides = [1, 1]} : vector<8x384xf32> to vector<8x128xf32>
    %cst_71 = arith.constant 5.000000e-01 : f32
    %218 = vector.broadcast %cst_71 : f32 to vector<8x128xf32>
    %219 = arith.addf %217, %218 : vector<8x128xf32>
    %220 = vector.extract_strided_slice %216 {offsets = [0, 128], sizes = [8, 128], strides = [1, 1]} : vector<8x384xf32> to vector<8x128xf32>
    %cst_72 = arith.constant 5.000000e-01 : f32
    %221 = vector.broadcast %cst_72 : f32 to vector<8x128xf32>
    %222 = arith.addf %220, %221 : vector<8x128xf32>
    %223 = vector.extract_strided_slice %216 {offsets = [0, 256], sizes = [8, 128], strides = [1, 1]} : vector<8x384xf32> to vector<8x128xf32>
    %cst_73 = arith.constant 5.000000e-01 : f32
    %224 = vector.broadcast %cst_73 : f32 to vector<8x128xf32>
    %225 = arith.addf %223, %224 : vector<8x128xf32>
    %226 = vector.extract_strided_slice %210 {offsets = [0, 384], sizes = [8, 128], strides = [1, 1]} : vector<8x512xf32> to vector<8x128xf32>
    %227 = math.tanh %226 : vector<8x128xf32>
    %228 = arith.mulf %222, %197 : vector<8x128xf32>
    %229 = arith.mulf %219, %227 : vector<8x128xf32>
    %230 = arith.addf %228, %229 : vector<8x128xf32>
    %231 = math.tanh %230 : vector<8x128xf32>
    %232 = arith.mulf %225, %231 : vector<8x128xf32>
    %233 = arith.index_cast %c6_i32 : i32 to index
    %c0_74 = arith.constant 0 : index
    %c0_75 = arith.constant 0 : index
    %234 = vector.load %arg4[%233, %c0_74, %c0_75] : memref<8x8x128xf32, #tpu.memory_space<vmem>>, vector<1x8x128xf32>
    %235 = vector.shape_cast %234 : vector<1x8x128xf32> to vector<8x128xf32>
    %236 = vector.shape_cast %232 : vector<8x128xf32> to vector<1x8x128xf32>
    tpu.vector_store %arg4[%233, %c0_74, %c0_75], %236 {strides = array<i32>} : memref<8x8x128xf32, #tpu.memory_space<vmem>>, vector<1x8x128xf32>,
    %c7_i32 = arith.constant 7 : i32
    %237 = arith.index_cast %c7_i32 : i32 to index
    %c0_76 = arith.constant 0 : index
    %c0_77 = arith.constant 0 : index
    %238 = vector.load %arg2[%237, %c0_76, %c0_77] : memref<8x8x512xbf16, #tpu.memory_space<vmem>>, vector<1x8x512xbf16>
    %239 = vector.shape_cast %238 : vector<1x8x512xbf16> to vector<8x512xbf16>
    %240 = arith.extf %239 : vector<8x512xbf16> to vector<8x512xf32>
    %241 = arith.truncf %232 : vector<8x128xf32> to vector<8x128xbf16>
    %cst_78 = arith.constant dense<0.000000e+00> : vector<8x512xf32>
    %242 = tpu.matmul %241, %3, %cst_78 {dimension_numbers = #tpu.dot_dimension_numbers<[1], [0], [0], [1], [0, 0, 1, 1], [], []>} : vector<8x128xbf16>, vector<128x512xbf16>, vector<8x512xf32> -> vector<8x512xf32>
    %243 = arith.addf %240, %242 : vector<8x512xf32>
    %244 = vector.extract_strided_slice %243 {offsets = [0, 0], sizes = [8, 384], strides = [1, 1]} : vector<8x512xf32> to vector<8x384xf32>
    %cst_79 = arith.constant 5.000000e-01 : f32
    %245 = vector.broadcast %cst_79 : f32 to vector<8x384xf32>
    %246 = arith.mulf %245, %244 : vector<8x384xf32>
    %247 = math.tanh %246 : vector<8x384xf32>
    %cst_80 = arith.constant 5.000000e-01 : f32
    %248 = vector.broadcast %cst_80 : f32 to vector<8x384xf32>
    %249 = arith.mulf %248, %247 : vector<8x384xf32>
    %250 = vector.extract_strided_slice %249 {offsets = [0, 0], sizes = [8, 128], strides = [1, 1]} : vector<8x384xf32> to vector<8x128xf32>
    %cst_81 = arith.constant 5.000000e-01 : f32
    %251 = vector.broadcast %cst_81 : f32 to vector<8x128xf32>
    %252 = arith.addf %250, %251 : vector<8x128xf32>
    %253 = vector.extract_strided_slice %249 {offsets = [0, 128], sizes = [8, 128], strides = [1, 1]} : vector<8x384xf32> to vector<8x128xf32>
    %cst_82 = arith.constant 5.000000e-01 : f32
    %254 = vector.broadcast %cst_82 : f32 to vector<8x128xf32>
    %255 = arith.addf %253, %254 : vector<8x128xf32>
    %256 = vector.extract_strided_slice %249 {offsets = [0, 256], sizes = [8, 128], strides = [1, 1]} : vector<8x384xf32> to vector<8x128xf32>
    %cst_83 = arith.constant 5.000000e-01 : f32
    %257 = vector.broadcast %cst_83 : f32 to vector<8x128xf32>
    %258 = arith.addf %256, %257 : vector<8x128xf32>
    %259 = vector.extract_strided_slice %243 {offsets = [0, 384], sizes = [8, 128], strides = [1, 1]} : vector<8x512xf32> to vector<8x128xf32>
    %260 = math.tanh %259 : vector<8x128xf32>
    %261 = arith.mulf %255, %230 : vector<8x128xf32>
    %262 = arith.mulf %252, %260 : vector<8x128xf32>
    %263 = arith.addf %261, %262 : vector<8x128xf32>
    %264 = math.tanh %263 : vector<8x128xf32>
    %265 = arith.mulf %258, %264 : vector<8x128xf32>
    %266 = arith.index_cast %c7_i32 : i32 to index
    %c0_84 = arith.constant 0 : index
    %c0_85 = arith.constant 0 : index
    %267 = vector.load %arg4[%266, %c0_84, %c0_85] : memref<8x8x128xf32, #tpu.memory_space<vmem>>, vector<1x8x128xf32>
    %268 = vector.shape_cast %267 : vector<1x8x128xf32> to vector<8x128xf32>
    %269 = vector.shape_cast %265 : vector<8x128xf32> to vector<1x8x128xf32>
    tpu.vector_store %arg4[%266, %c0_84, %c0_85], %269 {strides = array<i32>} : memref<8x8x128xf32, #tpu.memory_space<vmem>>, vector<1x8x128xf32>,
    %c8_i32 = arith.constant 8 : i32
    %c0_86 = arith.constant 0 : index
    %c0_87 = arith.constant 0 : index
    %270 = vector.load %arg5[%c0_86, %c0_87] : memref<8x128xf32, #tpu.memory_space<vmem>>, vector<8x128xf32>
    tpu.vector_store %arg5[%c0_86, %c0_87], %265 {strides = array<i32>} : memref<8x128xf32, #tpu.memory_space<vmem>>, vector<8x128xf32>,
    %c0_88 = arith.constant 0 : index
    %c0_89 = arith.constant 0 : index
    %271 = vector.load %arg6[%c0_88, %c0_89] : memref<8x128xf32, #tpu.memory_space<vmem>>, vector<8x128xf32>
    tpu.vector_store %arg6[%c0_88, %c0_89], %263 {strides = array<i32>} : memref<8x128xf32, #tpu.memory_space<vmem>>, vector<8x128xf32>,
    return
  }
  func.func @transform_0(%arg0: i32, %arg1: i32) -> (i32, i32, i32) {
    %c0_i32 = arith.constant 0 : i32
    %c0_i32_0 = arith.constant 0 : i32
    return %arg1, %arg0, %c0_i32 : i32, i32, i32
  }
  func.func @transform_1(%arg0: i32, %arg1: i32) -> (i32, i32) {
    %c0_i32 = arith.constant 0 : i32
    %c0_i32_0 = arith.constant 0 : i32
    %c0_i32_1 = arith.constant 0 : i32
    return %c0_i32, %c0_i32_0 : i32, i32
  }
  func.func @transform_2(%arg0: i32, %arg1: i32) -> (i32, i32, i32) {
    %c0_i32 = arith.constant 0 : i32
    %c0_i32_0 = arith.constant 0 : i32
    return %arg1, %arg0, %c0_i32 : i32, i32, i32
  }
}

</mosaic_0001>

<bundles_post_ra>
// kernel: tpu_custom_call.1
= control target key start
LH: loop header
LB: loop body
LE: loop exit
PB: predicated region body
PF: predicated region fallthrough
CT: control target
= control target key end

     0   :  { %7 = vsyncpa [#allocation5], 0  ;;  %s1832_s0 = inlined_call_operand.hbm [shape: bf16[8,8,512], index: 0, kind: input, shape index: {}]   ;;  %s1833_s1 = inlined_call_operand.hbm [shape: bf16[128,512], index: 1, kind: input, shape index: {}]   ;;  %s1834_s2 = inlined_call_operand.hbm [shape: f32[8,8,128], index: 2, kind: output, shape index: {}]  }
   0x1   :  { %8 = vsyncpa [#allocation8], 0 }
   0x2   :  { %9 = vsyncpa [#allocation6], 0  ;;  %s1444_s9 = smov [#allocation4]   ;;  %s1372_s13 = scalar_lea.hbm %s1832_s0, 2048 }
   0x3   :  { %s15_s10 = sshll.u32 %s1444_s9, 4  ;;  %p1373_p0 = scmp.ne.s32.totalorder %s1832_s0, %s1372_s13  ;;  %s16_s10 = int_to_ptr.vmem [resolvable:$true] %s15_s10 }
   0x4   :  { %p1376_p1 = scmp.lt.u32.totalorder %s1372_s13, %s1832_s0 }
   0x6   :  { %p1378_p2 = pnand %p1376_p1, %p1373_p0 }
   0x8   :  { %1381 = shalt.err (!%p1378_p2)
}
   0x9   :  { %s1382_s18 = scalar_lea.vmem %s16_s10, 2048  ;;  %p1387_p4 = scmp.lt.s32.totalorder %s16_s10, %s16_s10 }
   0xa   :  { %p1383_p3 = scmp.ne.s32.totalorder %s16_s10, %s1382_s18  ;;  %p1388_p5 = scmp.lt.s32.totalorder %s1382_s18, %s1382_s18 }
   0xc   :  { %p1389_p6 = por %p1388_p5, %p1387_p4 }
   0xe   :  { %p1390_p7 = pnand %p1389_p6, %p1383_p3 }
  0x10   :  { %1393 = shalt.err (!%p1390_p7)
}
  0x11   :  { %s1445_s19 = smov 256   ;;  %s1446_s20 = smov 16  }
  0x12   :  { %21 = dma.hbm_to_vmem [thread:$0]  %s1832_s0, 2048, %s16_s10, [#allocation5], %s1445_s19, %s1445_s19, %s1446_s20  }
  0x13   :  { %s1447_s23 = smov [#allocation7]   ;;  %s1394_s27 = scalar_lea.hbm %s1833_s1, 4096 }
  0x14   :  { %s27_s24 = sshll.u32 %s1447_s23, 4  ;;  %p1395_p8 = scmp.ne.s32.totalorder %s1833_s1, %s1394_s27  ;;  %s28_s24 = int_to_ptr.vmem [resolvable:$true] %s27_s24 }
  0x15   :  { %p1398_p9 = scmp.lt.u32.totalorder %s1394_s27, %s1833_s1 }
  0x17   :  { %p1400_p10 = pnand %p1398_p9, %p1395_p8 }
  0x19   :  { %1403 = shalt.err (!%p1400_p10)
}
  0x1a   :  { %s1404_s4 = scalar_lea.vmem %s28_s24, 4096  ;;  %p1409_p12 = scmp.lt.s32.totalorder %s28_s24, %s28_s24 }
  0x1b   :  { %p1405_p11 = scmp.ne.s32.totalorder %s28_s24, %s1404_s4  ;;  %p1410_p13 = scmp.lt.s32.totalorder %s1404_s4, %s1404_s4 }
  0x1d   :  { %p1411_p0 = por %p1410_p13, %p1409_p12 }
  0x1f   :  { %p1412_p1 = pnand %p1411_p0, %p1405_p11 }
  0x21   :  { %1415 = shalt.err (!%p1412_p1)
}
  0x22   :  { %33 = dma.hbm_to_vmem [thread:$0]  %s1833_s1, 4096, %s28_s24, [#allocation8], %s1445_s19, %s1445_s19, %s1446_s20  }
  0x23   :  { %1438 = dma.done.wait [#allocation5], 2048  }
  0x24   :  { %1439 = vsyncadd [#allocation5], 4294965248 }
  0x25   :  { %1440 = dma.done.wait [#allocation8], 4096  }
  0x26   :  { %1441 = vsyncadd [#allocation8], 4294963200  ;;  %v1448_v0 = vmov 0   ;;  %v1494_v1 = vld [vmem:[#allocation7 + $0x4] ss:$16 sps:$4 sm:$0xff]   ;;  %v1449_v33 = vmov 0.0|0.0  }
  0x27   :  { %280 = vmatprep.mubr.bf16.mxu0 %v1448_v0  ;;  %321 = vmatprep.mubr.bf16.mxu1 %v1448_v0  ;;  %v1496_v2 = vld [vmem:[#allocation7] ss:$16 sps:$4 sm:$0xff]   ;;  %v1499_v3 = vld [vmem:[#allocation7 + $0xc] ss:$16 sps:$4 sm:$0xff]   ;;  %v1502_v4 = vld [vmem:[#allocation7 + $0x24] ss:$16 sps:$4 sm:$0xff]  }
  0x28   :  { %248 = vmatprep.subr.bf16.mxu0 %v1494_v1  ;;  %v1504_v5 = vld [vmem:[#allocation7 + $0x8] ss:$16 sps:$4 sm:$0xff]   ;;  %v1506_v6 = vld [vmem:[#allocation7 + $0x20] ss:$16 sps:$4 sm:$0xff]   ;;  %289 = vmatprep.subr.bf16.mxu1 %v1499_v3  ;;  %v1509_v7 = vld [vmem:[#allocation7 + $0x2c] ss:$16 sps:$4 sm:$0xff]  }
  0x29   :  { %249 = vmatpush1.bf16.msra.mxu0 %v1496_v2  ;;  %290 = vmatpush1.bf16.msra.mxu1 %v1504_v5  ;;  %v1513_v8 = vld [vmem:[#allocation7 + $0x44] ss:$16 sps:$4 sm:$0xff]   ;;  %v1516_v9 = vld [vmem:[#allocation7 + $0x28] ss:$16 sps:$4 sm:$0xff]   ;;  %v1518_v10 = vld [vmem:[#allocation7 + $0x40] ss:$16 sps:$4 sm:$0xff]  }
  0x2a   :  { %250 = vmatprep.subr.bf16.mxu0 %v1502_v4  ;;  %291 = vmatprep.subr.bf16.mxu1 %v1509_v7  ;;  %v1521_v11 = vld [vmem:[#allocation7 + $0x4c] ss:$16 sps:$4 sm:$0xff]   ;;  %v1524_v12 = vld [vmem:[#allocation7 + $0x64] ss:$16 sps:$4 sm:$0xff]   ;;  %v1527_v13 = vld [vmem:[#allocation7 + $0x48] ss:$16 sps:$4 sm:$0xff]  }
  0x2b   :  { %v1530_v14 = vld [vmem:[#allocation7 + $0x6c] ss:$16 sps:$4 sm:$0xff]   ;;  %v1533_v15 = vld [vmem:[#allocation7 + $0x60] ss:$16 sps:$4 sm:$0xff]   ;;  %v1536_v16 = vld [vmem:[#allocation7 + $0x84] ss:$16 sps:$4 sm:$0xff]  }
  0x2c   :  { %v1539_v17 = vld [vmem:[#allocation7 + $0x68] ss:$16 sps:$4 sm:$0xff]   ;;  %v1542_v18 = vld [vmem:[#allocation7 + $0x8c] ss:$16 sps:$4 sm:$0xff]   ;;  %v1545_v19 = vld [vmem:[#allocation7 + $0x80] ss:$16 sps:$4 sm:$0xff]  }
  0x2d   :  { %251 = vmatpush1.bf16.msra.mxu0 %v1506_v6  ;;  %292 = vmatpush1.bf16.msra.mxu1 %v1516_v9  ;;  %v1548_v20 = vld [vmem:[#allocation7 + $0xa4] ss:$16 sps:$4 sm:$0xff]   ;;  %v1551_v21 = vld [vmem:[#allocation7 + $0x88] ss:$16 sps:$4 sm:$0xff]   ;;  %v1554_v22 = vld [vmem:[#allocation7 + $0xac] ss:$16 sps:$4 sm:$0xff]  }
  0x2e   :  { %252 = vmatprep.subr.bf16.mxu0 %v1513_v8  ;;  %293 = vmatprep.subr.bf16.mxu1 %v1521_v11  ;;  %v1557_v23 = vld [vmem:[#allocation7 + $0xa0] ss:$16 sps:$4 sm:$0xff]   ;;  %v1560_v24 = vld [vmem:[#allocation7 + $0xc4] ss:$16 sps:$4 sm:$0xff]   ;;  %v1563_v25 = vld [vmem:[#allocation7 + $0xa8] ss:$16 sps:$4 sm:$0xff]  }
  0x2f   :  { %v1566_v26 = vld [vmem:[#allocation7 + $0xcc] ss:$16 sps:$4 sm:$0xff]   ;;  %v1569_v27 = vld [vmem:[#allocation7 + $0xc0] ss:$16 sps:$4 sm:$0xff]   ;;  %v1572_v28 = vld [vmem:[#allocation7 + $0xe4] ss:$16 sps:$4 sm:$0xff]  }
  0x30   :  { %v1575_v29 = vld [vmem:[#allocation7 + $0xc8] ss:$16 sps:$4 sm:$0xff]   ;;  %v1578_v30 = vld [vmem:[#allocation7 + $0xec] ss:$16 sps:$4 sm:$0xff]   ;;  %v1581_v31 = vld [vmem:[#allocation7 + $0xe0] ss:$16 sps:$4 sm:$0xff]  }
  0x31   :  { %253 = vmatpush1.bf16.msra.mxu0 %v1518_v10  ;;  %294 = vmatpush1.bf16.msra.mxu1 %v1527_v13  ;;  %v1585_v32 = vld [vmem:[#allocation7 + $0xe8] ss:$16 sps:$4 sm:$0xff]   ;;  %v81_v34 = vld [vmem:[#allocation4] sm:$0xff]  ;;  %s1450_s1 = smov [#allocation9]  }
  0x32   :  { %254 = vmatprep.subr.bf16.mxu0 %v1524_v12  ;;  %295 = vmatprep.subr.bf16.mxu1 %v1530_v14  ;;  %v83_v35 = vunpack.c.l.bf16 %v81_v34  ;;  %v82_v36 = vld [vmem:[#allocation4 + $0x8] sm:$0xff]  ;;  %v84_v37 = vunpack.c.h.bf16 %v81_v34  ;;  %s1158_s6 = sshll.u32 %s1450_s1, 4  ;;  %s1159_s6 = int_to_ptr.vmem [resolvable:$true] %s1158_s6 }
  0x33   :  { %v86_v39 = vunpack.c.h.bf16 %v82_v36  ;;  %v85_v51 = vunpack.c.l.bf16 %v82_v36  ;;  %s1416_s7 = scalar_lea.vmem %s1159_s6, 1024  ;;  %p1421_p3 = scmp.lt.s32.totalorder %s1159_s6, %s1159_s6 }
  0x34   :  { %p1417_p2 = scmp.ne.s32.totalorder %s1159_s6, %s1416_s7  ;;  %p1422_p4 = scmp.lt.s32.totalorder %s1416_s7, %s1416_s7 }
  0x35   :  { %255 = vmatpush1.bf16.msra.mxu0 %v1533_v15  ;;  %296 = vmatpush1.bf16.msra.mxu1 %v1539_v17 }
  0x36   :  { %256 = vmatprep.subr.bf16.mxu0 %v1536_v16  ;;  %297 = vmatprep.subr.bf16.mxu1 %v1542_v18  ;;  %p1423_p5 = por %p1422_p4, %p1421_p3 }
  0x38   :  { %p1424_p6 = pnand %p1423_p5, %p1417_p2 }
  0x39   :  { %257 = vmatpush1.bf16.msra.mxu0 %v1545_v19  ;;  %298 = vmatpush1.bf16.msra.mxu1 %v1551_v21 }
  0x3a   :  { %258 = vmatprep.subr.bf16.mxu0 %v1548_v20  ;;  %299 = vmatprep.subr.bf16.mxu1 %v1554_v22 }
  0x3d   :  { %259 = vmatpush1.bf16.msra.mxu0 %v1557_v23  ;;  %300 = vmatpush1.bf16.msra.mxu1 %v1563_v25 }
  0x3e   :  { %260 = vmatprep.subr.bf16.mxu0 %v1560_v24  ;;  %301 = vmatprep.subr.bf16.mxu1 %v1566_v26 }
  0x41   :  { %261 = vmatpush1.bf16.msra.mxu0 %v1569_v27  ;;  %302 = vmatpush1.bf16.msra.mxu1 %v1575_v29 }
  0x42   :  { %262 = vmatprep.subr.bf16.mxu0 %v1572_v28  ;;  %303 = vmatprep.subr.bf16.mxu1 %v1578_v30 }
  0x45   :  { %263 = vmatpush1.bf16.msra.mxu0 %v1581_v31  ;;  %304 = vmatpush1.bf16.msra.mxu1 %v1585_v32 }
  0x46   :  { %361 = vmatprep.subr.bf16.mxu0 %v1494_v1  ;;  %402 = vmatprep.subr.bf16.mxu1 %v1499_v3 }
  0x48   :  { %281 = vmatmul.mubr.bf16.vlgmr.msra.gmra.mrb[0].mxu0 %v1449_v33  ;;  %322 = vmatmul.mubr.bf16.vlgmr.msra.gmra.mrb[0].mxu1 %v1449_v33 }
  0x49   :  { %362 = vmatpush1.bf16.msra.mxu0 %v1496_v2  ;;  %393 = vmatprep.mubr.bf16.mxu0 %v1448_v0 }
  0x4a   :  { %363 = vmatprep.subr.bf16.mxu0 %v1502_v4  ;;  %403 = vmatpush1.bf16.msra.mxu1 %v1504_v5 }
  0x4b   :  { %434 = vmatprep.mubr.bf16.mxu1 %v1448_v0  ;;  %404 = vmatprep.subr.bf16.mxu1 %v1509_v7 }
  0x4d   :  { %364 = vmatpush1.bf16.msra.mxu0 %v1506_v6 }
  0x4e   :  { %365 = vmatprep.subr.bf16.mxu0 %v1513_v8  ;;  %405 = vmatpush1.bf16.msra.mxu1 %v1516_v9 }
  0x4f   :  { %406 = vmatprep.subr.bf16.mxu1 %v1521_v11 }
  0x51   :  { %366 = vmatpush1.bf16.msra.mxu0 %v1518_v10 }
  0x52   :  { %367 = vmatprep.subr.bf16.mxu0 %v1524_v12  ;;  %407 = vmatpush1.bf16.msra.mxu1 %v1527_v13 }
  0x53   :  { %408 = vmatprep.subr.bf16.mxu1 %v1530_v14 }
  0x55   :  { %368 = vmatpush1.bf16.msra.mxu0 %v1533_v15 }
  0x56   :  { %369 = vmatprep.subr.bf16.mxu0 %v1536_v16  ;;  %409 = vmatpush1.bf16.msra.mxu1 %v1539_v17 }
  0x57   :  { %410 = vmatprep.subr.bf16.mxu1 %v1542_v18 }
  0x59   :  { %370 = vmatpush1.bf16.msra.mxu0 %v1545_v19 }
  0x5a   :  { %371 = vmatprep.subr.bf16.mxu0 %v1548_v20  ;;  %411 = vmatpush1.bf16.msra.mxu1 %v1551_v21 }
  0x5b   :  { %412 = vmatprep.subr.bf16.mxu1 %v1554_v22 }
  0x5d   :  { %372 = vmatpush1.bf16.msra.mxu0 %v1557_v23 }
  0x5e   :  { %373 = vmatprep.subr.bf16.mxu0 %v1560_v24  ;;  %413 = vmatpush1.bf16.msra.mxu1 %v1563_v25 }
  0x5f   :  { %414 = vmatprep.subr.bf16.mxu1 %v1566_v26 }
  0x61   :  { %374 = vmatpush1.bf16.msra.mxu0 %v1569_v27 }
  0x62   :  { %375 = vmatprep.subr.bf16.mxu0 %v1572_v28  ;;  %415 = vmatpush1.bf16.msra.mxu1 %v1575_v29 }
  0x63   :  { %416 = vmatprep.subr.bf16.mxu1 %v1578_v30 }
  0x65   :  { %376 = vmatpush1.bf16.msra.mxu0 %v1581_v31 }
  0x66   :  { %475 = vmatprep.subr.bf16.mxu0 %v1494_v1  ;;  %417 = vmatpush1.bf16.msra.mxu1 %v1585_v32 }
  0x67   :  { %516 = vmatprep.subr.bf16.mxu1 %v1499_v3 }
 0x11b   :  { %v282_v38 = vpop.f32.mrb[0].mxu0  ;;  %v323_v44 = vpop.f32.mrb[0].mxu1 }
 0x11c   :  { %v330_v40 = vadd.f32 %v282_v38, %v83_v35  ;;  %v284_v41 = vpop.f32.mrb[1].mxu0  ;;  %v325_v47 = vpop.f32.mrb[1].mxu1  ;;  %v332_v53 = vadd.f32 %v323_v44, %v85_v51 }
 0x11d   :  { %v331_v42 = vadd.f32 %v284_v41, %v84_v37  ;;  %v286_v43 = vpop.f32.mrb[2].mxu0  ;;  %v333_v49 = vadd.f32 %v325_v47, %v86_v39  ;;  %v327_v50 = vpop.f32.mrb[2].mxu1 }
 0x11e   :  { %v334_v45 = vmul.f32 0.5, %v330_v40  ;;  %v287_v46 = vpop.f32.mrb[3].mxu0  ;;  %v328_v52 = vpop.f32.mrb[3].mxu1  ;;  %v336_v54 = vmul.f32 0.5, %v332_v53  ;;  %v354_v40 = vld [vmem:[#allocation4 + $0x10] sm:$0xff] }
 0x11f   :  { %v335_v48 = vmul.f32 0.5, %v331_v42  ;;  %v356_v41 = vunpack.c.l.bf16 %v354_v40  ;;  %v355_v42 = vld [vmem:[#allocation4 + $0x18] sm:$0xff]  ;;  %v357_v43 = vunpack.c.h.bf16 %v354_v40 }
 0x120   :  { %1260 = vtanh.f32 %v334_v45 }
 0x121   :  { %1262 = vtanh.f32 %v335_v48  ;;  %v359_v48 = vunpack.c.h.bf16 %v355_v42 }
 0x122   :  { %1264 = vtanh.f32 %v333_v49 }
 0x123   :  { %1266 = vtanh.f32 %v336_v54 }
 0x12a   :  { %v1261_v55 = vpop.eup %1260 }
 0x12b   :  { %v1263_v56 = vpop.eup %1262  ;;  %v340_v57 = vmul.f32 0.5, %v1261_v55 }
 0x12c   :  { %v341_v58 = vmul.f32 0.5, %v1263_v56  ;;  %v1265_v59 = vpop.eup %1264 }
 0x12d   :  { %v343_v60 = vadd.f32 0.5, %v340_v57  ;;  %v1267_v34 = vpop.eup %1266 }
 0x12e   :  { %v344_v61 = vadd.f32 0.5, %v341_v58  ;;  %v342_v35 = vmul.f32 0.5, %v1267_v34  ;;  %v358_v58 = vunpack.c.l.bf16 %v355_v42 }
 0x12f   :  { %v348_v62 = vmul.f32 %v1265_v59, %v343_v60 }
 0x130   :  { %v347_v63 = vmul.f32 0.0, %v344_v61  ;;  %v345_v36 = vadd.f32 0.5, %v342_v35 }
 0x132   :  { %v1626_v33 = vadd.f32 %v348_v62, %v347_v63 }
 0x134   :  { %1268 = vtanh.f32 %v1626_v33 }
 0x13e   :  { %v1269_v37 = vpop.eup %1268 }
 0x13f   :  { %v351_v38 = vmul.f32 %v1269_v37, %v345_v36 }
 0x141   :  { %352 = vst [vmem:[#allocation9] sm:$0xff] %v351_v38  ;;  %v360_v39 = vpack.c.bf16 %v351_v38, %v351_v38 }
 0x143   :  { %394 = vmatmul.mubr.bf16.vlgmr.msra.gmra.mrb[4].mxu0 %v360_v39  ;;  %435 = vmatmul.mubr.bf16.vlgmr.msra.gmra.mrb[4].mxu1 %v360_v39 }
 0x144   :  { %476 = vmatpush1.bf16.msra.mxu0 %v1496_v2  ;;  %517 = vmatpush1.bf16.msra.mxu1 %v1504_v5 }
 0x145   :  { %477 = vmatprep.subr.bf16.mxu0 %v1502_v4  ;;  %518 = vmatprep.subr.bf16.mxu1 %v1509_v7 }
 0x146   :  { %507 = vmatprep.mubr.bf16.mxu0 %v1448_v0  ;;  %548 = vmatprep.mubr.bf16.mxu1 %v1448_v0 }
 0x148   :  { %478 = vmatpush1.bf16.msra.mxu0 %v1506_v6  ;;  %519 = vmatpush1.bf16.msra.mxu1 %v1516_v9 }
 0x149   :  { %479 = vmatprep.subr.bf16.mxu0 %v1513_v8  ;;  %520 = vmatprep.subr.bf16.mxu1 %v1521_v11 }
 0x14c   :  { %480 = vmatpush1.bf16.msra.mxu0 %v1518_v10  ;;  %521 = vmatpush1.bf16.msra.mxu1 %v1527_v13 }
 0x14d   :  { %481 = vmatprep.subr.bf16.mxu0 %v1524_v12  ;;  %522 = vmatprep.subr.bf16.mxu1 %v1530_v14 }
 0x150   :  { %482 = vmatpush1.bf16.msra.mxu0 %v1533_v15  ;;  %523 = vmatpush1.bf16.msra.mxu1 %v1539_v17 }
 0x151   :  { %483 = vmatprep.subr.bf16.mxu0 %v1536_v16  ;;  %524 = vmatprep.subr.bf16.mxu1 %v1542_v18 }
 0x154   :  { %484 = vmatpush1.bf16.msra.mxu0 %v1545_v19  ;;  %525 = vmatpush1.bf16.msra.mxu1 %v1551_v21 }
 0x155   :  { %485 = vmatprep.subr.bf16.mxu0 %v1548_v20  ;;  %526 = vmatprep.subr.bf16.mxu1 %v1554_v22 }
 0x158   :  { %486 = vmatpush1.bf16.msra.mxu0 %v1557_v23  ;;  %527 = vmatpush1.bf16.msra.mxu1 %v1563_v25 }
 0x159   :  { %487 = vmatprep.subr.bf16.mxu0 %v1560_v24  ;;  %528 = vmatprep.subr.bf16.mxu1 %v1566_v26 }
 0x15c   :  { %488 = vmatpush1.bf16.msra.mxu0 %v1569_v27  ;;  %529 = vmatpush1.bf16.msra.mxu1 %v1575_v29 }
 0x15d   :  { %489 = vmatprep.subr.bf16.mxu0 %v1572_v28  ;;  %530 = vmatprep.subr.bf16.mxu1 %v1578_v30 }
 0x160   :  { %490 = vmatpush1.bf16.msra.mxu0 %v1581_v31  ;;  %531 = vmatpush1.bf16.msra.mxu1 %v1585_v32 }
 0x161   :  { %589 = vmatprep.subr.bf16.mxu0 %v1494_v1  ;;  %630 = vmatprep.subr.bf16.mxu1 %v1499_v3 }
 0x216   :  { %v395_v44 = vpop.f32.mrb[4].mxu0  ;;  %v436_v45 = vpop.f32.mrb[4].mxu1 }
 0x217   :  { %v443_v46 = vadd.f32 %v395_v44, %v356_v41  ;;  %v397_v47 = vpop.f32.mrb[5].mxu0  ;;  %v438_v49 = vpop.f32.mrb[5].mxu1  ;;  %v445_v59 = vadd.f32 %v436_v45, %v358_v58 }
 0x218   :  { %v444_v50 = vadd.f32 %v397_v47, %v357_v43  ;;  %v399_v51 = vpop.f32.mrb[6].mxu0  ;;  %v440_v52 = vpop.f32.mrb[6].mxu1  ;;  %v446_v57 = vadd.f32 %v438_v49, %v359_v48  ;;  %v469_v48 = vld [vmem:[#allocation4 + $0x28] sm:$0xff] }
 0x219   :  { %v447_v53 = vmul.f32 0.5, %v443_v46  ;;  %v400_v54 = vpop.f32.mrb[7].mxu0  ;;  %v441_v55 = vpop.f32.mrb[7].mxu1  ;;  %v449_v60 = vmul.f32 0.5, %v445_v59 }
 0x21a   :  { %v448_v56 = vmul.f32 0.5, %v444_v50  ;;  %v473_v54 = vunpack.c.h.bf16 %v469_v48 }
 0x21b   :  { %1270 = vtanh.f32 %v447_v53 }
 0x21c   :  { %1272 = vtanh.f32 %v448_v56 }
 0x21d   :  { %1274 = vtanh.f32 %v446_v57 }
 0x21e   :  { %1276 = vtanh.f32 %v449_v60 }
 0x225   :  { %v1271_v61 = vpop.eup %1270 }
 0x226   :  { %v453_v62 = vmul.f32 0.5, %v1271_v61  ;;  %v1273_v63 = vpop.eup %1272 }
 0x227   :  { %v454_v35 = vmul.f32 0.5, %v1273_v63  ;;  %v1275_v36 = vpop.eup %1274 }
 0x228   :  { %v456_v34 = vadd.f32 0.5, %v453_v62  ;;  %v1277_v41 = vpop.eup %1276 }
 0x229   :  { %v457_v37 = vadd.f32 0.5, %v454_v35  ;;  %v455_v42 = vmul.f32 0.5, %v1277_v41 }
 0x22a   :  { %v461_v38 = vmul.f32 %v1275_v36, %v456_v34  ;;  %v472_v34 = vunpack.c.l.bf16 %v469_v48 }
 0x22b   :  { %v460_v39 = vmul.f32 %v457_v37, %v1626_v33  ;;  %v458_v43 = vadd.f32 0.5, %v455_v42  ;;  %v468_v33 = vld [vmem:[#allocation4 + $0x20] sm:$0xff] }
 0x22c   :  { %v470_v47 = vunpack.c.l.bf16 %v468_v33  ;;  %v471_v49 = vunpack.c.h.bf16 %v468_v33 }
 0x22d   :  { %v1664_v40 = vadd.f32 %v461_v38, %v460_v39 }
 0x22f   :  { %1278 = vtanh.f32 %v1664_v40 }
 0x239   :  { %v1279_v44 = vpop.eup %1278 }
 0x23a   :  { %v464_v45 = vmul.f32 %v1279_v44, %v458_v43 }
 0x23c   :  { %466 = vst [vmem:[#allocation9 + $0x8] sm:$0xff] %v464_v45  ;;  %v474_v46 = vpack.c.bf16 %v464_v45, %v464_v45 }
 0x23e   :  { %508 = vmatmul.mubr.bf16.vlgmr.msra.gmra.mrb[8].mxu0 %v474_v46  ;;  %549 = vmatmul.mubr.bf16.vlgmr.msra.gmra.mrb[8].mxu1 %v474_v46 }
 0x23f   :  { %590 = vmatpush1.bf16.msra.mxu0 %v1496_v2  ;;  %631 = vmatpush1.bf16.msra.mxu1 %v1504_v5 }
 0x240   :  { %591 = vmatprep.subr.bf16.mxu0 %v1502_v4  ;;  %632 = vmatprep.subr.bf16.mxu1 %v1509_v7 }
 0x241   :  { %621 = vmatprep.mubr.bf16.mxu0 %v1448_v0  ;;  %662 = vmatprep.mubr.bf16.mxu1 %v1448_v0 }
 0x243   :  { %592 = vmatpush1.bf16.msra.mxu0 %v1506_v6  ;;  %633 = vmatpush1.bf16.msra.mxu1 %v1516_v9 }
 0x244   :  { %593 = vmatprep.subr.bf16.mxu0 %v1513_v8  ;;  %634 = vmatprep.subr.bf16.mxu1 %v1521_v11 }
 0x247   :  { %594 = vmatpush1.bf16.msra.mxu0 %v1518_v10  ;;  %635 = vmatpush1.bf16.msra.mxu1 %v1527_v13 }
 0x248   :  { %595 = vmatprep.subr.bf16.mxu0 %v1524_v12  ;;  %636 = vmatprep.subr.bf16.mxu1 %v1530_v14 }
 0x24b   :  { %596 = vmatpush1.bf16.msra.mxu0 %v1533_v15  ;;  %637 = vmatpush1.bf16.msra.mxu1 %v1539_v17 }
 0x24c   :  { %597 = vmatprep.subr.bf16.mxu0 %v1536_v16  ;;  %638 = vmatprep.subr.bf16.mxu1 %v1542_v18 }
 0x24f   :  { %598 = vmatpush1.bf16.msra.mxu0 %v1545_v19  ;;  %639 = vmatpush1.bf16.msra.mxu1 %v1551_v21 }
 0x250   :  { %599 = vmatprep.subr.bf16.mxu0 %v1548_v20  ;;  %640 = vmatprep.subr.bf16.mxu1 %v1554_v22 }
 0x253   :  { %600 = vmatpush1.bf16.msra.mxu0 %v1557_v23  ;;  %641 = vmatpush1.bf16.msra.mxu1 %v1563_v25 }
 0x254   :  { %601 = vmatprep.subr.bf16.mxu0 %v1560_v24  ;;  %642 = vmatprep.subr.bf16.mxu1 %v1566_v26 }
 0x257   :  { %602 = vmatpush1.bf16.msra.mxu0 %v1569_v27  ;;  %643 = vmatpush1.bf16.msra.mxu1 %v1575_v29 }
 0x258   :  { %603 = vmatprep.subr.bf16.mxu0 %v1572_v28  ;;  %644 = vmatprep.subr.bf16.mxu1 %v1578_v30 }
 0x25b   :  { %604 = vmatpush1.bf16.msra.mxu0 %v1581_v31  ;;  %645 = vmatpush1.bf16.msra.mxu1 %v1585_v32 }
 0x25c   :  { %703 = vmatprep.subr.bf16.mxu0 %v1494_v1  ;;  %744 = vmatprep.subr.bf16.mxu1 %v1499_v3 }
 0x311   :  { %v509_v50 = vpop.f32.mrb[8].mxu0  ;;  %v550_v51 = vpop.f32.mrb[8].mxu1 }
 0x312   :  { %v557_v52 = vadd.f32 %v509_v50, %v470_v47  ;;  %v511_v53 = vpop.f32.mrb[9].mxu0  ;;  %v552_v55 = vpop.f32.mrb[9].mxu1  ;;  %v559_v35 = vadd.f32 %v550_v51, %v472_v34 }
 0x313   :  { %v558_v56 = vadd.f32 %v511_v53, %v471_v49  ;;  %v513_v57 = vpop.f32.mrb[10].mxu0  ;;  %v554_v58 = vpop.f32.mrb[10].mxu1  ;;  %v560_v63 = vadd.f32 %v552_v55, %v473_v54  ;;  %v583_v54 = vld [vmem:[#allocation4 + $0x38] sm:$0xff] }
 0x314   :  { %v561_v59 = vmul.f32 0.5, %v557_v52  ;;  %v514_v60 = vpop.f32.mrb[11].mxu0  ;;  %v555_v61 = vpop.f32.mrb[11].mxu1  ;;  %v563_v36 = vmul.f32 0.5, %v559_v35 }
 0x315   :  { %v562_v62 = vmul.f32 0.5, %v558_v56  ;;  %v587_v60 = vunpack.c.h.bf16 %v583_v54 }
 0x316   :  { %1280 = vtanh.f32 %v561_v59 }
 0x317   :  { %1282 = vtanh.f32 %v562_v62 }
 0x318   :  { %1284 = vtanh.f32 %v560_v63 }
 0x319   :  { %1286 = vtanh.f32 %v563_v36 }
 0x320   :  { %v1281_v37 = vpop.eup %1280 }
 0x321   :  { %v567_v38 = vmul.f32 0.5, %v1281_v37  ;;  %v1283_v39 = vpop.eup %1282 }
 0x322   :  { %v568_v42 = vmul.f32 0.5, %v1283_v39  ;;  %v1285_v43 = vpop.eup %1284 }
 0x323   :  { %v570_v41 = vadd.f32 0.5, %v567_v38  ;;  %v1287_v47 = vpop.eup %1286 }
 0x324   :  { %v571_v44 = vadd.f32 0.5, %v568_v42  ;;  %v569_v48 = vmul.f32 0.5, %v1287_v47 }
 0x325   :  { %v575_v45 = vmul.f32 %v1285_v43, %v570_v41  ;;  %v586_v41 = vunpack.c.l.bf16 %v583_v54 }
 0x326   :  { %v574_v46 = vmul.f32 %v571_v44, %v1664_v40  ;;  %v572_v49 = vadd.f32 0.5, %v569_v48  ;;  %v582_v40 = vld [vmem:[#allocation4 + $0x30] sm:$0xff] }
 0x327   :  { %v584_v53 = vunpack.c.l.bf16 %v582_v40  ;;  %v585_v55 = vunpack.c.h.bf16 %v582_v40 }
 0x328   :  { %v1702_v33 = vadd.f32 %v575_v45, %v574_v46 }
 0x32a   :  { %1288 = vtanh.f32 %v1702_v33 }
 0x334   :  { %v1289_v50 = vpop.eup %1288 }
 0x335   :  { %v578_v51 = vmul.f32 %v1289_v50, %v572_v49 }
 0x337   :  { %580 = vst [vmem:[#allocation9 + $0x10] sm:$0xff] %v578_v51  ;;  %v588_v52 = vpack.c.bf16 %v578_v51, %v578_v51 }
 0x339   :  { %622 = vmatmul.mubr.bf16.vlgmr.msra.gmra.mrb[12].mxu0 %v588_v52  ;;  %663 = vmatmul.mubr.bf16.vlgmr.msra.gmra.mrb[12].mxu1 %v588_v52 }
 0x33a   :  { %704 = vmatpush1.bf16.msra.mxu0 %v1496_v2  ;;  %745 = vmatpush1.bf16.msra.mxu1 %v1504_v5 }
 0x33b   :  { %705 = vmatprep.subr.bf16.mxu0 %v1502_v4  ;;  %746 = vmatprep.subr.bf16.mxu1 %v1509_v7 }
 0x33c   :  { %735 = vmatprep.mubr.bf16.mxu0 %v1448_v0  ;;  %776 = vmatprep.mubr.bf16.mxu1 %v1448_v0 }
 0x33e   :  { %706 = vmatpush1.bf16.msra.mxu0 %v1506_v6  ;;  %747 = vmatpush1.bf16.msra.mxu1 %v1516_v9 }
 0x33f   :  { %707 = vmatprep.subr.bf16.mxu0 %v1513_v8  ;;  %748 = vmatprep.subr.bf16.mxu1 %v1521_v11 }
 0x342   :  { %708 = vmatpush1.bf16.msra.mxu0 %v1518_v10  ;;  %749 = vmatpush1.bf16.msra.mxu1 %v1527_v13 }
 0x343   :  { %709 = vmatprep.subr.bf16.mxu0 %v1524_v12  ;;  %750 = vmatprep.subr.bf16.mxu1 %v1530_v14 }
 0x346   :  { %710 = vmatpush1.bf16.msra.mxu0 %v1533_v15  ;;  %751 = vmatpush1.bf16.msra.mxu1 %v1539_v17 }
 0x347   :  { %711 = vmatprep.subr.bf16.mxu0 %v1536_v16  ;;  %752 = vmatprep.subr.bf16.mxu1 %v1542_v18 }
 0x34a   :  { %712 = vmatpush1.bf16.msra.mxu0 %v1545_v19  ;;  %753 = vmatpush1.bf16.msra.mxu1 %v1551_v21 }
 0x34b   :  { %713 = vmatprep.subr.bf16.mxu0 %v1548_v20  ;;  %754 = vmatprep.subr.bf16.mxu1 %v1554_v22 }
 0x34e   :  { %714 = vmatpush1.bf16.msra.mxu0 %v1557_v23  ;;  %755 = vmatpush1.bf16.msra.mxu1 %v1563_v25 }
 0x34f   :  { %715 = vmatprep.subr.bf16.mxu0 %v1560_v24  ;;  %756 = vmatprep.subr.bf16.mxu1 %v1566_v26 }
 0x352   :  { %716 = vmatpush1.bf16.msra.mxu0 %v1569_v27  ;;  %757 = vmatpush1.bf16.msra.mxu1 %v1575_v29 }
 0x353   :  { %717 = vmatprep.subr.bf16.mxu0 %v1572_v28  ;;  %758 = vmatprep.subr.bf16.mxu1 %v1578_v30 }
 0x356   :  { %718 = vmatpush1.bf16.msra.mxu0 %v1581_v31  ;;  %759 = vmatpush1.bf16.msra.mxu1 %v1585_v32 }
 0x357   :  { %817 = vmatprep.subr.bf16.mxu0 %v1494_v1  ;;  %858 = vmatprep.subr.bf16.mxu1 %v1499_v3 }
 0x40c   :  { %v623_v56 = vpop.f32.mrb[12].mxu0  ;;  %v664_v57 = vpop.f32.mrb[12].mxu1 }
 0x40d   :  { %v671_v58 = vadd.f32 %v623_v56, %v584_v53  ;;  %v625_v59 = vpop.f32.mrb[13].mxu0  ;;  %v666_v61 = vpop.f32.mrb[13].mxu1  ;;  %v673_v42 = vadd.f32 %v664_v57, %v586_v41 }
 0x40e   :  { %v672_v62 = vadd.f32 %v625_v59, %v585_v55  ;;  %v627_v63 = vpop.f32.mrb[14].mxu0  ;;  %v668_v34 = vpop.f32.mrb[14].mxu1  ;;  %v674_v39 = vadd.f32 %v666_v61, %v587_v60  ;;  %v697_v60 = vld [vmem:[#allocation4 + $0x48] sm:$0xff] }
 0x40f   :  { %v675_v35 = vmul.f32 0.5, %v671_v58  ;;  %v628_v36 = vpop.f32.mrb[15].mxu0  ;;  %v669_v37 = vpop.f32.mrb[15].mxu1  ;;  %v677_v43 = vmul.f32 0.5, %v673_v42 }
 0x410   :  { %v676_v38 = vmul.f32 0.5, %v672_v62  ;;  %v701_v36 = vunpack.c.h.bf16 %v697_v60 }
 0x411   :  { %1290 = vtanh.f32 %v675_v35 }
 0x412   :  { %1292 = vtanh.f32 %v676_v38 }
 0x413   :  { %1294 = vtanh.f32 %v674_v39 }
 0x414   :  { %1296 = vtanh.f32 %v677_v43 }
 0x41b   :  { %v1291_v44 = vpop.eup %1290 }
 0x41c   :  { %v681_v45 = vmul.f32 0.5, %v1291_v44  ;;  %v1293_v46 = vpop.eup %1292 }
 0x41d   :  { %v682_v48 = vmul.f32 0.5, %v1293_v46  ;;  %v1295_v49 = vpop.eup %1294 }
 0x41e   :  { %v684_v47 = vadd.f32 0.5, %v681_v45  ;;  %v1297_v53 = vpop.eup %1296 }
 0x41f   :  { %v685_v50 = vadd.f32 0.5, %v682_v48  ;;  %v683_v54 = vmul.f32 0.5, %v1297_v53 }
 0x420   :  { %v689_v51 = vmul.f32 %v1295_v49, %v684_v47 }
 0x421   :  { %v688_v52 = vmul.f32 %v685_v50, %v1702_v33  ;;  %v686_v55 = vadd.f32 0.5, %v683_v54  ;;  %v696_v33 = vld [vmem:[#allocation4 + $0x40] sm:$0xff] }
 0x422   :  { %v698_v59 = vunpack.c.l.bf16 %v696_v33  ;;  %v699_v61 = vunpack.c.h.bf16 %v696_v33 }
 0x423   :  { %v1740_v40 = vadd.f32 %v689_v51, %v688_v52 }
 0x425   :  { %1298 = vtanh.f32 %v1740_v40 }
 0x42f   :  { %v1299_v56 = vpop.eup %1298 }
 0x430   :  { %v692_v57 = vmul.f32 %v1299_v56, %v686_v55 }
 0x432   :  { %694 = vst [vmem:[#allocation9 + $0x18] sm:$0xff] %v692_v57  ;;  %v702_v58 = vpack.c.bf16 %v692_v57, %v692_v57 }
 0x434   :  { %736 = vmatmul.mubr.bf16.vlgmr.msra.gmra.mrb[16].mxu0 %v702_v58  ;;  %777 = vmatmul.mubr.bf16.vlgmr.msra.gmra.mrb[16].mxu1 %v702_v58 }
 0x435   :  { %818 = vmatpush1.bf16.msra.mxu0 %v1496_v2  ;;  %859 = vmatpush1.bf16.msra.mxu1 %v1504_v5 }
 0x436   :  { %819 = vmatprep.subr.bf16.mxu0 %v1502_v4  ;;  %860 = vmatprep.subr.bf16.mxu1 %v1509_v7 }
 0x437   :  { %849 = vmatprep.mubr.bf16.mxu0 %v1448_v0  ;;  %890 = vmatprep.mubr.bf16.mxu1 %v1448_v0 }
 0x439   :  { %820 = vmatpush1.bf16.msra.mxu0 %v1506_v6  ;;  %861 = vmatpush1.bf16.msra.mxu1 %v1516_v9 }
 0x43a   :  { %821 = vmatprep.subr.bf16.mxu0 %v1513_v8  ;;  %862 = vmatprep.subr.bf16.mxu1 %v1521_v11 }
 0x43d   :  { %822 = vmatpush1.bf16.msra.mxu0 %v1518_v10  ;;  %863 = vmatpush1.bf16.msra.mxu1 %v1527_v13 }
 0x43e   :  { %823 = vmatprep.subr.bf16.mxu0 %v1524_v12  ;;  %864 = vmatprep.subr.bf16.mxu1 %v1530_v14 }
 0x441   :  { %824 = vmatpush1.bf16.msra.mxu0 %v1533_v15  ;;  %865 = vmatpush1.bf16.msra.mxu1 %v1539_v17 }
 0x442   :  { %825 = vmatprep.subr.bf16.mxu0 %v1536_v16  ;;  %866 = vmatprep.subr.bf16.mxu1 %v1542_v18 }
 0x445   :  { %826 = vmatpush1.bf16.msra.mxu0 %v1545_v19  ;;  %867 = vmatpush1.bf16.msra.mxu1 %v1551_v21 }
 0x446   :  { %827 = vmatprep.subr.bf16.mxu0 %v1548_v20  ;;  %868 = vmatprep.subr.bf16.mxu1 %v1554_v22 }
 0x449   :  { %828 = vmatpush1.bf16.msra.mxu0 %v1557_v23  ;;  %869 = vmatpush1.bf16.msra.mxu1 %v1563_v25 }
 0x44a   :  { %829 = vmatprep.subr.bf16.mxu0 %v1560_v24  ;;  %870 = vmatprep.subr.bf16.mxu1 %v1566_v26 }
 0x44d   :  { %830 = vmatpush1.bf16.msra.mxu0 %v1569_v27  ;;  %871 = vmatpush1.bf16.msra.mxu1 %v1575_v29 }
 0x44e   :  { %831 = vmatprep.subr.bf16.mxu0 %v1572_v28  ;;  %872 = vmatprep.subr.bf16.mxu1 %v1578_v30 }
 0x451   :  { %832 = vmatpush1.bf16.msra.mxu0 %v1581_v31  ;;  %873 = vmatpush1.bf16.msra.mxu1 %v1585_v32 }
 0x452   :  { %931 = vmatprep.subr.bf16.mxu0 %v1494_v1  ;;  %972 = vmatprep.subr.bf16.mxu1 %v1499_v3  ;;  %v700_v3 = vunpack.c.l.bf16 %v697_v60 }
 0x507   :  { %v737_v62 = vpop.f32.mrb[16].mxu0  ;;  %v778_v63 = vpop.f32.mrb[16].mxu1 }
 0x508   :  { %v785_v34 = vadd.f32 %v737_v62, %v698_v59  ;;  %v739_v35 = vpop.f32.mrb[17].mxu0  ;;  %v780_v37 = vpop.f32.mrb[17].mxu1  ;;  %v787_v46 = vadd.f32 %v778_v63, %v700_v3  ;;  %v1347_v3 = vld [vmem:[#allocation7 + $0x28] ss:$16 sps:$4 sm:$0xff]  }
 0x509   :  { %v786_v38 = vadd.f32 %v739_v35, %v699_v61  ;;  %v741_v39 = vpop.f32.mrb[18].mxu0  ;;  %v782_v41 = vpop.f32.mrb[18].mxu1  ;;  %v788_v1 = vadd.f32 %v780_v37, %v701_v36 }
 0x50a   :  { %v789_v42 = vmul.f32 0.5, %v785_v34  ;;  %v742_v43 = vpop.f32.mrb[19].mxu0  ;;  %v783_v44 = vpop.f32.mrb[19].mxu1  ;;  %v791_v47 = vmul.f32 0.5, %v787_v46  ;;  %v1348_v46 = vld [vmem:[#allocation7 + $0x44] ss:$16 sps:$4 sm:$0xff]  }
 0x50b   :  { %v790_v45 = vmul.f32 0.5, %v786_v38  ;;  %v1343_v43 = vld [vmem:[#allocation7 + $0x8] ss:$16 sps:$4 sm:$0xff]   ;;  %v1344_v44 = vld [vmem:[#allocation7 + $0x24] ss:$16 sps:$4 sm:$0xff]  }
 0x50c   :  { %1300 = vtanh.f32 %v789_v42  ;;  %v1342_v42 = vld [vmem:[#allocation7] ss:$16 sps:$4 sm:$0xff]  }
 0x50d   :  { %1302 = vtanh.f32 %v790_v45  ;;  %v1345_v45 = vld [vmem:[#allocation7 + $0x2c] ss:$16 sps:$4 sm:$0xff]  }
 0x50e   :  { %1304 = vtanh.f32 %v788_v1  ;;  %v1346_v1 = vld [vmem:[#allocation7 + $0x20] ss:$16 sps:$4 sm:$0xff]  }
 0x50f   :  { %1306 = vtanh.f32 %v791_v47  ;;  %v1349_v47 = vld [vmem:[#allocation7 + $0x4c] ss:$16 sps:$4 sm:$0xff]  }
 0x516   :  { %v1301_v48 = vpop.eup %1300 }
 0x517   :  { %v795_v49 = vmul.f32 0.5, %v1301_v48  ;;  %v1303_v50 = vpop.eup %1302  ;;  %v1350_v48 = vld [vmem:[#allocation7 + $0x40] ss:$16 sps:$4 sm:$0xff]  }
 0x518   :  { %v796_v52 = vmul.f32 0.5, %v1303_v50  ;;  %v1305_v53 = vpop.eup %1304  ;;  %v1352_v50 = vld [vmem:[#allocation7 + $0x64] ss:$16 sps:$4 sm:$0xff]  }
 0x519   :  { %v798_v51 = vadd.f32 0.5, %v795_v49  ;;  %v1307_v58 = vpop.eup %1306  ;;  %v1351_v49 = vld [vmem:[#allocation7 + $0x48] ss:$16 sps:$4 sm:$0xff]  }
 0x51a   :  { %v799_v54 = vadd.f32 0.5, %v796_v52  ;;  %v797_v33 = vmul.f32 0.5, %v1307_v58  ;;  %v1354_v52 = vld [vmem:[#allocation7 + $0x60] ss:$16 sps:$4 sm:$0xff]   ;;  %v1361_v58 = vld [vmem:[#allocation7 + $0xac] ss:$16 sps:$4 sm:$0xff]  }
 0x51b   :  { %v803_v55 = vmul.f32 %v1305_v53, %v798_v51  ;;  %v1353_v51 = vld [vmem:[#allocation7 + $0x6c] ss:$16 sps:$4 sm:$0xff]   ;;  %v1355_v53 = vld [vmem:[#allocation7 + $0x68] ss:$16 sps:$4 sm:$0xff]  }
 0x51c   :  { %v802_v56 = vmul.f32 %v799_v54, %v1740_v40  ;;  %v800_v59 = vadd.f32 0.5, %v797_v33  ;;  %v1357_v54 = vld [vmem:[#allocation7 + $0x8c] ss:$16 sps:$4 sm:$0xff]   ;;  %v1362_v33 = vld [vmem:[#allocation7 + $0xa0] ss:$16 sps:$4 sm:$0xff]  }
 0x51e   :  { %v1778_v57 = vadd.f32 %v803_v55, %v802_v56  ;;  %v1358_v55 = vld [vmem:[#allocation7 + $0x80] ss:$16 sps:$4 sm:$0xff]   ;;  %v1359_v56 = vld [vmem:[#allocation7 + $0x88] ss:$16 sps:$4 sm:$0xff]  }
 0x520   :  { %1308 = vtanh.f32 %v1778_v57 }
 0x52a   :  { %v1309_v60 = vpop.eup %1308 }
 0x52b   :  { %v806_v61 = vmul.f32 %v1309_v60, %v800_v59  ;;  %v1363_v59 = vld [vmem:[#allocation7 + $0xa8] ss:$16 sps:$4 sm:$0xff]   ;;  %v1364_v60 = vld [vmem:[#allocation7 + $0xc4] ss:$16 sps:$4 sm:$0xff]  }
 0x52d   :  { %808 = vst [vmem:[#allocation9 + $0x20] sm:$0xff] %v806_v61  ;;  %v816_v62 = vpack.c.bf16 %v806_v61, %v806_v61  ;;  %v1365_v61 = vld [vmem:[#allocation7 + $0xcc] ss:$16 sps:$4 sm:$0xff]  }
 0x52f   :  { %850 = vmatmul.mubr.bf16.vlgmr.msra.gmra.mrb[20].mxu0 %v816_v62  ;;  %891 = vmatmul.mubr.bf16.vlgmr.msra.gmra.mrb[20].mxu1 %v816_v62  ;;  %v1366_v62 = vld [vmem:[#allocation7 + $0xc0] ss:$16 sps:$4 sm:$0xff]  }
 0x530   :  { %932 = vmatpush1.bf16.msra.mxu0 %v1496_v2  ;;  %973 = vmatpush1.bf16.msra.mxu1 %v1504_v5  ;;  %v1340_v2 = vld [vmem:[#allocation7 + $0x4] ss:$16 sps:$4 sm:$0xff]  }
 0x531   :  { %933 = vmatprep.subr.bf16.mxu0 %v1502_v4  ;;  %974 = vmatprep.subr.bf16.mxu1 %v1509_v7  ;;  %v1341_v4 = vld [vmem:[#allocation7 + $0xc] ss:$16 sps:$4 sm:$0xff]   ;;  %v810_v5 = vld [vmem:[#allocation4 + $0x50] sm:$0xff] }
 0x532   :  { %963 = vmatprep.mubr.bf16.mxu0 %v1448_v0  ;;  %1004 = vmatprep.mubr.bf16.mxu1 %v1448_v0  ;;  %v811_v7 = vld [vmem:[#allocation4 + $0x58] sm:$0xff] }
 0x534   :  { %934 = vmatpush1.bf16.msra.mxu0 %v1506_v6  ;;  %975 = vmatpush1.bf16.msra.mxu1 %v1516_v9  ;;  %v812_v6 = vunpack.c.l.bf16 %v810_v5 }
 0x535   :  { %935 = vmatprep.subr.bf16.mxu0 %v1513_v8  ;;  %976 = vmatprep.subr.bf16.mxu1 %v1521_v11  ;;  %v813_v8 = vunpack.c.h.bf16 %v810_v5  ;;  %v1369_v5 = vld [vmem:[#allocation7 + $0xec] ss:$16 sps:$4 sm:$0xff]  }
 0x538   :  { %936 = vmatpush1.bf16.msra.mxu0 %v1518_v10  ;;  %977 = vmatpush1.bf16.msra.mxu1 %v1527_v13  ;;  %v815_v13 = vunpack.c.h.bf16 %v811_v7 }
 0x539   :  { %937 = vmatprep.subr.bf16.mxu0 %v1524_v12  ;;  %978 = vmatprep.subr.bf16.mxu1 %v1530_v14 }
 0x53c   :  { %938 = vmatpush1.bf16.msra.mxu0 %v1533_v15  ;;  %979 = vmatpush1.bf16.msra.mxu1 %v1539_v17 }
 0x53d   :  { %939 = vmatprep.subr.bf16.mxu0 %v1536_v16  ;;  %980 = vmatprep.subr.bf16.mxu1 %v1542_v18 }
 0x540   :  { %940 = vmatpush1.bf16.msra.mxu0 %v1545_v19  ;;  %981 = vmatpush1.bf16.msra.mxu1 %v1551_v21 }
 0x541   :  { %941 = vmatprep.subr.bf16.mxu0 %v1548_v20  ;;  %982 = vmatprep.subr.bf16.mxu1 %v1554_v22 }
 0x544   :  { %942 = vmatpush1.bf16.msra.mxu0 %v1557_v23  ;;  %983 = vmatpush1.bf16.msra.mxu1 %v1563_v25  ;;  %v814_v23 = vunpack.c.l.bf16 %v811_v7  ;;  %v1371_v7 = vld [vmem:[#allocation7 + $0xe8] ss:$16 sps:$4 sm:$0xff]  }
 0x545   :  { %943 = vmatprep.subr.bf16.mxu0 %v1560_v24  ;;  %984 = vmatprep.subr.bf16.mxu1 %v1566_v26 }
 0x548   :  { %944 = vmatpush1.bf16.msra.mxu0 %v1569_v27  ;;  %985 = vmatpush1.bf16.msra.mxu1 %v1575_v29 }
 0x549   :  { %945 = vmatprep.subr.bf16.mxu0 %v1572_v28  ;;  %986 = vmatprep.subr.bf16.mxu1 %v1578_v30 }
 0x54c   :  { %946 = vmatpush1.bf16.msra.mxu0 %v1581_v31  ;;  %987 = vmatpush1.bf16.msra.mxu1 %v1585_v32 }
 0x54d   :  { %1045 = vmatprep.subr.bf16.mxu0 %v1340_v2  ;;  %1086 = vmatprep.subr.bf16.mxu1 %v1341_v4  ;;  %v1367_v2 = vld [vmem:[#allocation7 + $0xc8] ss:$16 sps:$4 sm:$0xff]   ;;  %v1368_v4 = vld [vmem:[#allocation7 + $0xe4] ss:$16 sps:$4 sm:$0xff]  }
 0x602   :  { %v851_v9 = vpop.f32.mrb[20].mxu0  ;;  %v892_v10 = vpop.f32.mrb[20].mxu1 }
 0x603   :  { %v899_v11 = vadd.f32 %v851_v9, %v812_v6  ;;  %v853_v12 = vpop.f32.mrb[21].mxu0  ;;  %v894_v14 = vpop.f32.mrb[21].mxu1  ;;  %v901_v24 = vadd.f32 %v892_v10, %v814_v23  ;;  %v1370_v6 = vld [vmem:[#allocation7 + $0xe0] ss:$16 sps:$4 sm:$0xff]   ;;  %v925_v10 = vld [vmem:[#allocation4 + $0x68] sm:$0xff] }
 0x604   :  { %v900_v15 = vadd.f32 %v853_v12, %v813_v8  ;;  %v855_v16 = vpop.f32.mrb[22].mxu0  ;;  %v896_v17 = vpop.f32.mrb[22].mxu1  ;;  %v902_v22 = vadd.f32 %v894_v14, %v815_v13  ;;  %v924_v8 = vld [vmem:[#allocation4 + $0x60] sm:$0xff] }
 0x605   :  { %v903_v18 = vmul.f32 0.5, %v899_v11  ;;  %v856_v19 = vpop.f32.mrb[23].mxu0  ;;  %v897_v20 = vpop.f32.mrb[23].mxu1  ;;  %v905_v25 = vmul.f32 0.5, %v901_v24  ;;  %v926_v9 = vunpack.c.l.bf16 %v924_v8  ;;  %v927_v11 = vunpack.c.h.bf16 %v924_v8 }
 0x606   :  { %v904_v21 = vmul.f32 0.5, %v900_v15  ;;  %v929_v16 = vunpack.c.h.bf16 %v925_v10 }
 0x607   :  { %1310 = vtanh.f32 %v903_v18 }
 0x608   :  { %1312 = vtanh.f32 %v904_v21 }
 0x609   :  { %1314 = vtanh.f32 %v902_v22 }
 0x60a   :  { %1316 = vtanh.f32 %v905_v25 }
 0x611   :  { %v1311_v26 = vpop.eup %1310 }
 0x612   :  { %v909_v27 = vmul.f32 0.5, %v1311_v26  ;;  %v1313_v28 = vpop.eup %1312  ;;  %v928_v26 = vunpack.c.l.bf16 %v925_v10 }
 0x613   :  { %v910_v30 = vmul.f32 0.5, %v1313_v28  ;;  %v1315_v31 = vpop.eup %1314 }
 0x614   :  { %v912_v29 = vadd.f32 0.5, %v909_v27  ;;  %v1317_v35 = vpop.eup %1316 }
 0x615   :  { %v913_v32 = vadd.f32 0.5, %v910_v30  ;;  %v911_v36 = vmul.f32 0.5, %v1317_v35 }
 0x616   :  { %v917_v40 = vmul.f32 %v1315_v31, %v912_v29 }
 0x617   :  { %v916_v63 = vmul.f32 %v913_v32, %v1778_v57  ;;  %v914_v37 = vadd.f32 0.5, %v911_v36  ;;  %v1360_v57 = vld [vmem:[#allocation7 + $0xa4] ss:$16 sps:$4 sm:$0xff]  }
 0x619   :  { %v1814_v34 = vadd.f32 %v917_v40, %v916_v63 }
 0x61b   :  { %1318 = vtanh.f32 %v1814_v34 }
 0x625   :  { %v1319_v38 = vpop.eup %1318 }
 0x626   :  { %v920_v39 = vmul.f32 %v1319_v38, %v914_v37 }
 0x628   :  { %922 = vst [vmem:[#allocation9 + $0x28] sm:$0xff] %v920_v39  ;;  %v930_v41 = vpack.c.bf16 %v920_v39, %v920_v39 }
 0x62a   :  { %964 = vmatmul.mubr.bf16.vlgmr.msra.gmra.mrb[24].mxu0 %v930_v41  ;;  %1005 = vmatmul.mubr.bf16.vlgmr.msra.gmra.mrb[24].mxu1 %v930_v41 }
 0x62b   :  { %1046 = vmatpush1.bf16.msra.mxu0 %v1342_v42  ;;  %1087 = vmatpush1.bf16.msra.mxu1 %v1343_v43 }
 0x62c   :  { %1047 = vmatprep.subr.bf16.mxu0 %v1344_v44  ;;  %1088 = vmatprep.subr.bf16.mxu1 %v1345_v45 }
 0x62d   :  { %1077 = vmatprep.mubr.bf16.mxu0 %v1448_v0  ;;  %1118 = vmatprep.mubr.bf16.mxu1 %v1448_v0  ;;  %v1356_v0 = vld [vmem:[#allocation7 + $0x84] ss:$16 sps:$4 sm:$0xff]  }
 0x62f   :  { %1048 = vmatpush1.bf16.msra.mxu0 %v1346_v1  ;;  %1089 = vmatpush1.bf16.msra.mxu1 %v1347_v3  ;;  %v1038_v1 = vld [vmem:[#allocation4 + $0x70] sm:$0xff] }
 0x630   :  { %1049 = vmatprep.subr.bf16.mxu0 %v1348_v46  ;;  %1090 = vmatprep.subr.bf16.mxu1 %v1349_v47  ;;  %v1040_v3 = vunpack.c.l.bf16 %v1038_v1  ;;  %v1039_v46 = vld [vmem:[#allocation4 + $0x78] sm:$0xff]  ;;  %v1041_v47 = vunpack.c.h.bf16 %v1038_v1 }
 0x633   :  { %1050 = vmatpush1.bf16.msra.mxu0 %v1350_v48  ;;  %1091 = vmatpush1.bf16.msra.mxu1 %v1351_v49 }
 0x634   :  { %1051 = vmatprep.subr.bf16.mxu0 %v1352_v50  ;;  %1092 = vmatprep.subr.bf16.mxu1 %v1353_v51 }
 0x637   :  { %1052 = vmatpush1.bf16.msra.mxu0 %v1354_v52  ;;  %1093 = vmatpush1.bf16.msra.mxu1 %v1355_v53 }
 0x638   :  { %1053 = vmatprep.subr.bf16.mxu0 %v1356_v0  ;;  %1094 = vmatprep.subr.bf16.mxu1 %v1357_v54 }
 0x63b   :  { %1054 = vmatpush1.bf16.msra.mxu0 %v1358_v55  ;;  %1095 = vmatpush1.bf16.msra.mxu1 %v1359_v56 }
 0x63c   :  { %1055 = vmatprep.subr.bf16.mxu0 %v1360_v57  ;;  %1096 = vmatprep.subr.bf16.mxu1 %v1361_v58 }
 0x63f   :  { %1056 = vmatpush1.bf16.msra.mxu0 %v1362_v33  ;;  %1097 = vmatpush1.bf16.msra.mxu1 %v1363_v59  ;;  %v1042_v59 = vunpack.c.l.bf16 %v1039_v46 }
 0x640   :  { %1057 = vmatprep.subr.bf16.mxu0 %v1364_v60  ;;  %1098 = vmatprep.subr.bf16.mxu1 %v1365_v61 }
 0x643   :  { %1058 = vmatpush1.bf16.msra.mxu0 %v1366_v62  ;;  %1099 = vmatpush1.bf16.msra.mxu1 %v1367_v2 }
 0x644   :  { %1059 = vmatprep.subr.bf16.mxu0 %v1368_v4  ;;  %1100 = vmatprep.subr.bf16.mxu1 %v1369_v5 }
 0x647   :  { %1060 = vmatpush1.bf16.msra.mxu0 %v1370_v6  ;;  %1101 = vmatpush1.bf16.msra.mxu1 %v1371_v7 }
 0x6fd   :  { %v965_v12 = vpop.f32.mrb[24].mxu0  ;;  %v1006_v13 = vpop.f32.mrb[24].mxu1 }
 0x6fe   :  { %v1013_v14 = vadd.f32 %v965_v12, %v926_v9  ;;  %v967_v15 = vpop.f32.mrb[25].mxu0  ;;  %v1008_v17 = vpop.f32.mrb[25].mxu1  ;;  %v1015_v27 = vadd.f32 %v1006_v13, %v928_v26 }
 0x6ff   :  { %v1014_v18 = vadd.f32 %v967_v15, %v927_v11  ;;  %v969_v19 = vpop.f32.mrb[26].mxu0  ;;  %v1010_v20 = vpop.f32.mrb[26].mxu1  ;;  %v1016_v25 = vadd.f32 %v1008_v17, %v929_v16 }
 0x700   :  { %v1017_v21 = vmul.f32 0.5, %v1013_v14  ;;  %v970_v22 = vpop.f32.mrb[27].mxu0  ;;  %v1011_v23 = vpop.f32.mrb[27].mxu1  ;;  %v1019_v28 = vmul.f32 0.5, %v1015_v27 }
 0x701   :  { %v1018_v24 = vmul.f32 0.5, %v1014_v18 }
 0x702   :  { %1320 = vtanh.f32 %v1017_v21 }
 0x703   :  { %1322 = vtanh.f32 %v1018_v24 }
 0x704   :  { %1324 = vtanh.f32 %v1016_v25 }
 0x705   :  { %1326 = vtanh.f32 %v1019_v28 }
 0x70c   :  { %v1321_v29 = vpop.eup %1320 }
 0x70d   :  { %v1023_v30 = vmul.f32 0.5, %v1321_v29  ;;  %v1323_v31 = vpop.eup %1322 }
 0x70e   :  { %v1024_v40 = vmul.f32 0.5, %v1323_v31  ;;  %v1325_v63 = vpop.eup %1324 }
 0x70f   :  { %v1026_v32 = vadd.f32 0.5, %v1023_v30  ;;  %v1327_v39 = vpop.eup %1326 }
 0x710   :  { %v1027_v35 = vadd.f32 0.5, %v1024_v40  ;;  %v1025_v41 = vmul.f32 0.5, %v1327_v39 }
 0x711   :  { %v1031_v36 = vmul.f32 %v1325_v63, %v1026_v32 }
 0x712   :  { %v1030_v37 = vmul.f32 %v1027_v35, %v1814_v34  ;;  %v1028_v42 = vadd.f32 0.5, %v1025_v41  ;;  %v1043_v34 = vunpack.c.h.bf16 %v1039_v46 }
 0x714   :  { %v1032_v38 = vadd.f32 %v1031_v36, %v1030_v37 }
 0x716   :  { %1328 = vtanh.f32 %v1032_v38 }
 0x720   :  { %v1329_v43 = vpop.eup %1328 }
 0x721   :  { %v1034_v44 = vmul.f32 %v1329_v43, %v1028_v42 }
 0x723   :  { %1036 = vst [vmem:[#allocation9 + $0x30] sm:$0xff] %v1034_v44  ;;  %v1044_v45 = vpack.c.bf16 %v1034_v44, %v1034_v44 }
 0x725   :  { %1078 = vmatmul.mubr.bf16.vlgmr.msra.gmra.mrb[28].mxu0 %v1044_v45  ;;  %1119 = vmatmul.mubr.bf16.vlgmr.msra.gmra.mrb[28].mxu1 %v1044_v45 }
 0x7f8   :  { %v1079_v48 = vpop.f32.mrb[28].mxu0  ;;  %v1120_v49 = vpop.f32.mrb[28].mxu1 }
 0x7f9   :  { %v1127_v50 = vadd.f32 %v1079_v48, %v1040_v3  ;;  %v1081_v51 = vpop.f32.mrb[29].mxu0  ;;  %v1122_v52 = vpop.f32.mrb[29].mxu1  ;;  %v1129_v60 = vadd.f32 %v1120_v49, %v1042_v59 }
 0x7fa   :  { %v1128_v53 = vadd.f32 %v1081_v51, %v1041_v47  ;;  %v1083_v0 = vpop.f32.mrb[30].mxu0  ;;  %v1124_v54 = vpop.f32.mrb[30].mxu1  ;;  %v1130_v33 = vadd.f32 %v1122_v52, %v1043_v34 }
 0x7fb   :  { %v1131_v55 = vmul.f32 0.5, %v1127_v50  ;;  %v1084_v56 = vpop.f32.mrb[31].mxu0  ;;  %v1125_v57 = vpop.f32.mrb[31].mxu1  ;;  %v1133_v61 = vmul.f32 0.5, %v1129_v60 }
 0x7fc   :  { %v1132_v58 = vmul.f32 0.5, %v1128_v53 }
 0x7fd   :  { %1330 = vtanh.f32 %v1131_v55 }
 0x7fe   :  { %1332 = vtanh.f32 %v1132_v58 }
 0x7ff   :  { %1334 = vtanh.f32 %v1130_v33 }
 0x800   :  { %1336 = vtanh.f32 %v1133_v61 }
 0x807   :  { %v1331_v62 = vpop.eup %1330 }
 0x808   :  { %v1137_v2 = vmul.f32 0.5, %v1331_v62  ;;  %v1333_v4 = vpop.eup %1332 }
 0x809   :  { %v1138_v6 = vmul.f32 0.5, %v1333_v4  ;;  %v1335_v7 = vpop.eup %1334 }
 0x80a   :  { %v1140_v5 = vadd.f32 0.5, %v1137_v2  ;;  %v1337_v12 = vpop.eup %1336 }
 0x80b   :  { %v1141_v8 = vadd.f32 0.5, %v1138_v6  ;;  %v1139_v13 = vmul.f32 0.5, %v1337_v12 }
 0x80c   :  { %v1145_v9 = vmul.f32 %v1335_v7, %v1140_v5 }
 0x80d   :  { %v1144_v10 = vmul.f32 %v1141_v8, %v1032_v38  ;;  %v1142_v14 = vadd.f32 0.5, %v1139_v13 }
 0x80f   :  { %v1146_v11 = vadd.f32 %v1145_v9, %v1144_v10 }
 0x811   :  { %1338 = vtanh.f32 %v1146_v11 }
 0x81b   :  { %v1339_v15 = vpop.eup %1338 }
 0x81c   :  { %v1148_v16 = vmul.f32 %v1339_v15, %v1142_v14 }
 0x81e   :  { %1150 = vst [vmem:[#allocation9 + $0x38] sm:$0xff] %v1148_v16 }
 0x81f   :  { %1427 = shalt.err (!%p1424_p6)
}
 0x820   :  { %s1428_s10 = scalar_lea.hbm %s1834_s2, 1024 }
 0x821   :  { %p1429_p7 = scmp.ne.s32.totalorder %s1834_s2, %s1428_s10  ;;  %p1432_p8 = scmp.lt.u32.totalorder %s1428_s10, %s1834_s2 }
 0x823   :  { %p1434_p9 = pnand %p1432_p8, %p1429_p7 }
 0x825   :  { %1437 = shalt.err (!%p1434_p9)
}
 0x826   :  { %s1451_s15 = smov 128   ;;  %s1452_s16 = smov 8  }
 0x827   :  { %1164 = dma.vmem_to_hbm [thread:$0]  %s1159_s6, 1024, %s1834_s2, [#allocation6], %s1451_s15, %s1451_s15, %s1452_s16  }
 0x828   :  { %1442 = dma.done.wait [#allocation6], 1024  }
 0x829   :  { %1443 = vsyncadd [#allocation6], 4294966272 }
 0x82a   :  { %1168 = vsyncpa [#allocation5], 1 }
 0x82b   :  { %1169 = vsyncpa [#allocation8], 1 }
 0x82c   :  { %1170 = vsyncpa [#allocation6], 1 }

</bundles_post_ra>
